<compile_context>
chip_gen: v7x
topology: tpu7x:2x2x1
jax: 0.10.0
libtpu: 0.0.40
codegen_flags: <defaults>
</compile_context>

<pallas_src>
import functools
import math

import jax
import jax.numpy as jnp
from jax.experimental import pallas as pl
from jax.experimental.pallas import tpu as pltpu


def _fast_reciprocal(x):
    # EUP approximate reciprocal (frees VALU slots) + one Newton-Raphson step to
    # restore ~f32 accuracy; the operand is tiny ((H, L, 1)) so the fixup is free.
    r = pl.reciprocal(x, approx=True)
    return r * (2.0 - x * r)


def _mha_weights_kernel(q_ref, k_ref, v_ref,
                        w_in_ref, b_in_ref, w_out_ref, b_out_ref,
                        out_ref, attnw_ref,
                        *, num_heads, compute_dtype):
    """Full-softmax path (need_weights=True). One batch tile per grid step."""
    Bt, L, E = q_ref.shape
    S = k_ref.shape[1]
    H = num_heads
    hd = E // H
    cd = compute_dtype

    # Pre-transposed / pre-scaled weights: x @ w gives the projection directly.
    w_in = w_in_ref[...].astype(cd)                                   # (3, E, E)

    # Projections fused over the batch tile: (Bt*seq, E) MXU matmuls, f32 acc,
    # f32 bias adds.
    x_q = q_ref[...].reshape(Bt * L, E).astype(cd)
    x_k = k_ref[...].reshape(Bt * S, E).astype(cd)
    x_v = v_ref[...].reshape(Bt * S, E).astype(cd)
    qp = jnp.dot(x_q, w_in[0], preferred_element_type=jnp.float32) + b_in_ref[0]
    kp = jnp.dot(x_k, w_in[1], preferred_element_type=jnp.float32) + b_in_ref[1]
    vp = jnp.dot(x_v, w_in[2], preferred_element_type=jnp.float32) + b_in_ref[2]

    # Attention core per batch element (static unroll; Bt is small).
    # NOTE: head_dim here is tiny (8); for production sizes keep head_dim a
    # multiple of 128 so the MXU contraction is lane-dense.
    ctx_rows = []
    for b in range(Bt):
        qh = qp[b * L:(b + 1) * L].astype(cd).reshape(L, H, hd)
        kh = kp[b * S:(b + 1) * S].astype(cd).reshape(S, H, hd)
        vh = vp[b * S:(b + 1) * S].astype(cd).reshape(S, H, hd)

        logits = jnp.einsum('qhd,khd->hqk', qh, kh,
                            preferred_element_type=jnp.float32)       # (H, L, S)
        m = jnp.max(logits, axis=-1, keepdims=True)
        p = jnp.exp(logits - m)
        inv = _fast_reciprocal(jnp.sum(p, axis=-1, keepdims=True))
        probs = p * inv                                               # (H, L, S) f32

        ctx = jnp.einsum('hqk,khd->hqd', probs.astype(cd), vh,
                         preferred_element_type=jnp.float32)          # (H, L, hd)
        ctx_rows.append(jnp.transpose(ctx, (1, 0, 2)).reshape(L, E))
        # Head-averaged attention weights (PyTorch need_weights=True semantics).
        attnw_ref[b] = (probs.sum(axis=0) * (1.0 / H)).astype(attnw_ref.dtype)

    ctx_all = jnp.concatenate(ctx_rows, axis=0)                       # (Bt*L, E)
    out = jnp.dot(ctx_all.astype(cd), w_out_ref[...].astype(cd),
                  preferred_element_type=jnp.float32) + b_out_ref[...]
    out_ref[...] = out.reshape(Bt, L, E).astype(out_ref.dtype)


def _mha_flash_kernel(q_ref, k_ref, v_ref,
                      w_in_ref, b_in_ref, w_out_ref, b_out_ref,
                      out_ref,
                      qp_sc, m_sc, l_sc, acc_sc,
                      *, num_heads, compute_dtype):
    """Flash-style path (need_weights=False): grid = (batch tiles, KV tiles),
    online softmax with running max/sum/output accumulators in VMEM scratch."""
    kv = pl.program_id(1)
    Bt, L, E = q_ref.shape
    St = k_ref.shape[1]
    H = num_heads
    hd = E // H
    cd = compute_dtype

    w_in = w_in_ref[...].astype(cd)                                   # (3, E, E)

    @pl.when(kv == 0)
    def _():
        # Project q once per batch tile and reset the online-softmax state.
        x_q = q_ref[...].reshape(Bt * L, E).astype(cd)
        qp0 = jnp.dot(x_q, w_in[0], preferred_element_type=jnp.float32) + b_in_ref[0]
        qp_sc[...] = qp0
        m_sc[...] = jnp.full(m_sc.shape, -jnp.inf, dtype=m_sc.dtype)
        l_sc[...] = jnp.zeros(l_sc.shape, dtype=l_sc.dtype)
        acc_sc[...] = jnp.zeros(acc_sc.shape, dtype=acc_sc.dtype)

    # Project only this KV tile.
    x_k = k_ref[...].reshape(Bt * St, E).astype(cd)
    x_v = v_ref[...].reshape(Bt * St, E).astype(cd)
    kp = jnp.dot(x_k, w_in[1], preferred_element_type=jnp.float32) + b_in_ref[1]
    vp = jnp.dot(x_v, w_in[2], preferred_element_type=jnp.float32) + b_in_ref[2]
    qp = qp_sc[...]                                                   # (Bt*L, E) f32

    for b in range(Bt):                                               # static unroll
        qh = qp[b * L:(b + 1) * L].astype(cd).reshape(L, H, hd)
        kh = kp[b * St:(b + 1) * St].astype(cd).reshape(St, H, hd)
        vh = vp[b * St:(b + 1) * St].astype(cd).reshape(St, H, hd)

        s = jnp.einsum('qhd,khd->hqk', qh, kh,
                       preferred_element_type=jnp.float32)            # (H, L, St)
        m_prev = m_sc[b]                                              # (H, L, 1)
        m_new = jnp.maximum(m_prev, jnp.max(s, axis=-1, keepdims=True))
        alpha = jnp.exp(m_prev - m_new)
        p = jnp.exp(s - m_new)
        l_sc[b] = alpha * l_sc[b] + jnp.sum(p, axis=-1, keepdims=True)
        pv = jnp.einsum('hqk,khd->hqd', p.astype(cd), vh,
                        preferred_element_type=jnp.float32)           # (H, L, hd)
        acc_sc[b] = alpha * acc_sc[b] + pv
        m_sc[b] = m_new

    @pl.when(kv == pl.num_programs(1) - 1)
    def _():
        ctx_rows = []
        for b in range(Bt):
            ctx = acc_sc[b] * _fast_reciprocal(l_sc[b])               # (H, L, hd)
            ctx_rows.append(jnp.transpose(ctx, (1, 0, 2)).reshape(L, E))
        ctx_all = jnp.concatenate(ctx_rows, axis=0)                   # (Bt*L, E)
        out = jnp.dot(ctx_all.astype(cd), w_out_ref[...].astype(cd),
                      preferred_element_type=jnp.float32) + b_out_ref[...]
        out_ref[...] = out.reshape(Bt, L, E).astype(out_ref.dtype)


def prepare_mha_params(in_proj_weight, in_proj_bias, out_proj_weight, out_proj_bias,
                       num_heads):
    """Repack PyTorch-layout parameters for the kernels (done once, host-side):
    split in_proj into q/k/v, pre-transpose every weight so the kernel computes
    x @ W, fold the 1/sqrt(head_dim) scale into the q weight and bias, and
    pre-transpose the out-projection weight."""
    three_e, E = in_proj_weight.shape
    assert three_e == 3 * E and E % num_heads == 0
    scale = 1.0 / math.sqrt(E // num_heads)
    wq, wk, wv = in_proj_weight[:E], in_proj_weight[E:2 * E], in_proj_weight[2 * E:]
    bq, bk, bv = in_proj_bias[:E], in_proj_bias[E:2 * E], in_proj_bias[2 * E:]
    w_in_t = jnp.stack([wq.T * scale, wk.T, wv.T])                    # (3, E, E)
    b_in = jnp.stack([bq * scale, bk, bv])[:, None, :]                # (3, 1, E)
    w_out_t = out_proj_weight.T                                       # (E, E)
    b_out = out_proj_bias[None, :]                                    # (1, E)
    return w_in_t, b_in, w_out_t, b_out


def _default_batch_tile(B, L):
    divisors = [d for d in range(1, B + 1) if B % d == 0]
    cands = [d for d in divisors if d * max(L, 1) <= 256] or [1]
    # Prefer >= 2 grid steps so v7x's two TensorCores both get work.
    two_step = [d for d in cands if B // d >= 2]
    return max(two_step) if two_step else max(cands)


def _default_kv_tile(S):
    if S <= 8:
        return S
    cands = [t for t in range(8, min(S, 512) + 1, 8) if S % t == 0]
    return max(cands) if cands else S


def multi_head_attention(query, key, value, params, num_heads, *,
                         need_weights=True, batch_tile=None, kv_tile=None,
                         compute_dtype=jnp.float32):
    """Batch-first MHA matching F.multi_head_attention_forward with the module
    defaults (no masks, dropout=0, shared embed dim). Returns (attn_output,
    attn_weights): the head-averaged (B, L, S) matrix when need_weights=True,
    otherwise None (and the flash-style KV-tiled kernel is used)."""
    w_in_t, b_in, w_out_t, b_out = params
    B, L, E = query.shape
    S = key.shape[1]
    assert key.shape == (B, S, E) and value.shape == (B, S, E)
    assert E % num_heads == 0
    hd = E // num_heads

    if batch_tile is None:
        batch_tile = _default_batch_tile(B, L)
    assert B % batch_tile == 0, "batch_tile must divide the batch size"
    nb = B // batch_tile

    # NOTE: the grid-invariant weight blocks could additionally be single-buffered
    # (pipeline_mode=pl.Buffered(1) or a one-shot DMA to scratch) to avoid holding
    # two pipeline copies of each weight at large E.
    compiler_params = pltpu.CompilerParams(
        dimension_semantics=("parallel",) if need_weights else ("parallel", "arbitrary"),
        vmem_limit_bytes=32 * 1024 * 1024,  # above v5e's 16 MiB default scope
    )

    if need_weights:
        kernel = functools.partial(_mha_weights_kernel, num_heads=num_heads,
                                   compute_dtype=compute_dtype)
        out, attn_w = pl.pallas_call(
            kernel,
            out_shape=(
                jax.ShapeDtypeStruct((B, L, E), query.dtype),
                jax.ShapeDtypeStruct((B, L, S), jnp.float32),
            ),
            grid_spec=pltpu.PrefetchScalarGridSpec(
                num_scalar_prefetch=0,
                grid=(nb,),
                in_specs=[
                    pl.BlockSpec((batch_tile, L, E), lambda b: (b, 0, 0)),
                    pl.BlockSpec((batch_tile, S, E), lambda b: (b, 0, 0)),
                    pl.BlockSpec((batch_tile, S, E), lambda b: (b, 0, 0)),
                    pl.BlockSpec((3, E, E), lambda b: (0, 0, 0)),
                    pl.BlockSpec((3, 1, E), lambda b: (0, 0, 0)),
                    pl.BlockSpec((E, E), lambda b: (0, 0)),
                    pl.BlockSpec((1, E), lambda b: (0, 0)),
                ],
                out_specs=[
                    pl.BlockSpec((batch_tile, L, E), lambda b: (b, 0, 0)),
                    pl.BlockSpec((batch_tile, L, S), lambda b: (b, 0, 0)),
                ],
            ),
            compiler_params=compiler_params,
        )(query, key, value, w_in_t, b_in, w_out_t, b_out)
        return out, attn_w

    if kv_tile is None:
        kv_tile = _default_kv_tile(S)
    assert S % kv_tile == 0, "kv_tile must divide the source sequence length"
    nkv = S // kv_tile

    kernel = functools.partial(_mha_flash_kernel, num_heads=num_heads,
                               compute_dtype=compute_dtype)
    out = pl.pallas_call(
        kernel,
        out_shape=jax.ShapeDtypeStruct((B, L, E), query.dtype),
        grid_spec=pltpu.PrefetchScalarGridSpec(
            num_scalar_prefetch=0,
            grid=(nb, nkv),
            in_specs=[
                pl.BlockSpec((batch_tile, L, E), lambda b, k: (b, 0, 0)),
                pl.BlockSpec((batch_tile, kv_tile, E), lambda b, k: (b, k, 0)),
                pl.BlockSpec((batch_tile, kv_tile, E), lambda b, k: (b, k, 0)),
                pl.BlockSpec((3, E, E), lambda b, k: (0, 0, 0)),
                pl.BlockSpec((3, 1, E), lambda b, k: (0, 0, 0)),
                pl.BlockSpec((E, E), lambda b, k: (0, 0)),
                pl.BlockSpec((1, E), lambda b, k: (0, 0)),
            ],
            out_specs=pl.BlockSpec((batch_tile, L, E), lambda b, k: (b, 0, 0)),
            scratch_shapes=[
                pltpu.VMEM((batch_tile * L, E), jnp.float32),             # projected q
                pltpu.VMEM((batch_tile, num_heads, L, 1), jnp.float32),   # running max
                pltpu.VMEM((batch_tile, num_heads, L, 1), jnp.float32),   # running sum
                pltpu.VMEM((batch_tile, num_heads, L, hd), jnp.float32),  # output acc
            ],
        ),
        compiler_params=compiler_params,
    )(query, key, value, w_in_t, b_in, w_out_t, b_out)
    return out, None


def _ref_mha(q, k, v, in_proj_weight, in_proj_bias, out_w, out_b, num_heads):
    """Pure-JAX reference matching F.multi_head_attention_forward semantics."""
    B, L, E = q.shape
    S = k.shape[1]
    hd = E // num_heads
    wq, wk, wv = in_proj_weight[:E], in_proj_weight[E:2 * E], in_proj_weight[2 * E:]
    bq, bk, bv = in_proj_bias[:E], in_proj_bias[E:2 * E], in_proj_bias[2 * E:]
    qp = (q @ wq.T + bq) / math.sqrt(hd)
    kp = k @ wk.T + bk
    vp = v @ wv.T + bv
    qh = qp.reshape(B, L, num_heads, hd).transpose(0, 2, 1, 3)
    kh = kp.reshape(B, S, num_heads, hd).transpose(0, 2, 1, 3)
    vh = vp.reshape(B, S, num_heads, hd).transpose(0, 2, 1, 3)
    logits = qh @ kh.transpose(0, 1, 3, 2)
    probs = jax.nn.softmax(logits, axis=-1)
    ctx = (probs @ vh).transpose(0, 2, 1, 3).reshape(B, L, E)
    out = ctx @ out_w.T + out_b
    return out, probs.mean(axis=1)


if __name__ == "__main__":
    B, L, E, H = 4, 16, 32, 4        # batch, seq, embed_dim, num_heads (head_dim = 8)

    root = jax.random.PRNGKey(0)
    k_in, k_w, k_wo = jax.random.split(root, 3)

    # Parameters mirroring __init__/_reset_parameters: xavier_uniform in_proj_weight,
    # uniform out_proj weight, zero biases.
    a_in = math.sqrt(6.0 / (E + 3 * E))
    in_proj_weight = jax.random.uniform(k_w, (3 * E, E), jnp.float32, -a_in, a_in)
    a_out = math.sqrt(6.0 / (E + E))
    out_proj_weight = jax.random.uniform(k_wo, (E, E), jnp.float32, -a_out, a_out)
    in_proj_bias = jnp.zeros((3 * E,), jnp.float32)
    out_proj_bias = jnp.zeros((E,), jnp.float32)

    params = prepare_mha_params(in_proj_weight, in_proj_bias,
                                out_proj_weight, out_proj_bias, H)

    kq, kk, kvk = jax.random.split(k_in, 3)
    query = jax.random.normal(kq, (B, L, E), jnp.float32)
    key_t = jax.random.normal(kk, (B, L, E), jnp.float32)
    value = jax.random.normal(kvk, (B, L, E), jnp.float32)

    ref_out, ref_w = _ref_mha(query, key_t, value, in_proj_weight, in_proj_bias,
                              out_proj_weight, out_proj_bias, H)

    # 1) f32, need_weights=True (module default): (output, head-averaged weights).
    out, attn_w = multi_head_attention(query, key_t, value, params, H,
                                       need_weights=True, batch_tile=2)
    jax.block_until_ready((out, attn_w))
    assert jnp.allclose(out, ref_out, atol=5e-4, rtol=5e-4), "attn_output mismatch (f32)"
    assert jnp.allclose(attn_w, ref_w, atol=5e-4, rtol=5e-4), "attn_weights mismatch (f32)"

    # 2) f32, need_weights=False: flash-style KV-tiled online-softmax path (2 KV steps).
    out_flash, none_w = multi_head_attention(query, key_t, value, params, H,
                                             need_weights=False, batch_tile=2, kv_tile=8)
    jax.block_until_ready(out_flash)
    assert none_w is None
    assert jnp.allclose(out_flash, ref_out, atol=5e-4, rtol=5e-4), "attn_output mismatch (flash)"

    # 3) bf16 MXU inputs (v6e/v7x fast path); softmax/accumulation stay f32.
    out_bf16, attn_w_bf16 = multi_head_attention(query, key_t, value, params, H,
                                                 need_weights=True, batch_tile=2,
                                                 compute_dtype=jnp.bfloat16)
    jax.block_until_ready((out_bf16, attn_w_bf16))
    assert jnp.allclose(out_bf16, ref_out, atol=5e-2, rtol=5e-2), "attn_output mismatch (bf16)"
    assert jnp.allclose(attn_w_bf16, ref_w, atol=5e-2, rtol=5e-2), "attn_weights mismatch (bf16)"

    print("KERNEL_OK")
</pallas_src>

<mosaic_0001>
module attributes {stable_mosaic.version = 11 : i64} {
  func.func @_mha_weights_kernel(%arg0: i32, %arg1: memref<2x16x32xf32, #tpu.memory_space<vmem>>, %arg2: memref<2x16x32xf32, #tpu.memory_space<vmem>>, %arg3: memref<2x16x32xf32, #tpu.memory_space<vmem>>, %arg4: memref<3x32x32xf32, #tpu.memory_space<vmem>>, %arg5: memref<3x1x32xf32, #tpu.memory_space<vmem>>, %arg6: memref<32x32xf32, #tpu.memory_space<vmem>>, %arg7: memref<1x32xf32, #tpu.memory_space<vmem>>, %arg8: memref<2x16x32xf32, #tpu.memory_space<vmem>>, %arg9: memref<2x16x16xf32, #tpu.memory_space<vmem>>) attributes {dimension_semantics = [#tpu.dimension_semantics<parallel>], iteration_bounds = array<i64: 2>, scalar_prefetch = 0 : i64, scratch_operands = 0 : i64, tpu.core_type = #tpu.core_type<tc>, window_params = [{transform_indices = @transform_0, window_bounds = array<i64: 2, 16, 32>}, {transform_indices = @transform_1, window_bounds = array<i64: 2, 16, 32>}, {transform_indices = @transform_2, window_bounds = array<i64: 2, 16, 32>}, {pipeline_mode = #tpu.pipeline_mode<synchronous>, transform_indices = @transform_3, window_bounds = array<i64: 3, 32, 32>}, {pipeline_mode = #tpu.pipeline_mode<synchronous>, transform_indices = @transform_4, window_bounds = array<i64: 3, 1, 32>}, {pipeline_mode = #tpu.pipeline_mode<synchronous>, transform_indices = @transform_5, window_bounds = array<i64: 32, 32>}, {pipeline_mode = #tpu.pipeline_mode<synchronous>, transform_indices = @transform_6, window_bounds = array<i64: 1, 32>}, {transform_indices = @transform_7, window_bounds = array<i64: 2, 16, 32>}, {transform_indices = @transform_8, window_bounds = array<i64: 2, 16, 16>}]} {
    %c0 = arith.constant 0 : index
    %c0_0 = arith.constant 0 : index
    %c0_1 = arith.constant 0 : index
    %0 = vector.load %arg4[%c0, %c0_0, %c0_1] : memref<3x32x32xf32, #tpu.memory_space<vmem>>, vector<3x32x32xf32>
    %c0_2 = arith.constant 0 : index
    %c0_3 = arith.constant 0 : index
    %c0_4 = arith.constant 0 : index
    %1 = vector.load %arg1[%c0_2, %c0_3, %c0_4] : memref<2x16x32xf32, #tpu.memory_space<vmem>>, vector<2x16x32xf32>
    %2 = vector.shape_cast %1 : vector<2x16x32xf32> to vector<32x32xf32>
    %c0_5 = arith.constant 0 : index
    %c0_6 = arith.constant 0 : index
    %c0_7 = arith.constant 0 : index
    %3 = vector.load %arg2[%c0_5, %c0_6, %c0_7] : memref<2x16x32xf32, #tpu.memory_space<vmem>>, vector<2x16x32xf32>
    %4 = vector.shape_cast %3 : vector<2x16x32xf32> to vector<32x32xf32>
    %c0_8 = arith.constant 0 : index
    %c0_9 = arith.constant 0 : index
    %c0_10 = arith.constant 0 : index
    %5 = vector.load %arg3[%c0_8, %c0_9, %c0_10] : memref<2x16x32xf32, #tpu.memory_space<vmem>>, vector<2x16x32xf32>
    %6 = vector.shape_cast %5 : vector<2x16x32xf32> to vector<32x32xf32>
    %7 = vector.extract_strided_slice %0 {offsets = [0, 0, 0], sizes = [1, 32, 32], strides = [1, 1, 1]} : vector<3x32x32xf32> to vector<1x32x32xf32>
    %8 = vector.shape_cast %7 : vector<1x32x32xf32> to vector<32x32xf32>
    %cst = arith.constant dense<0.000000e+00> : vector<32x32xf32>
    %9 = tpu.matmul %2, %8, %cst {dimension_numbers = #tpu.dot_dimension_numbers<[1], [0], [0], [1], [0, 0, 1, 1], [], []>} : vector<32x32xf32>, vector<32x32xf32>, vector<32x32xf32> -> vector<32x32xf32>
    %c0_11 = arith.constant 0 : index
    %c0_12 = arith.constant 0 : index
    %c0_13 = arith.constant 0 : index
    %10 = vector.load %arg5[%c0_11, %c0_12, %c0_13] : memref<3x1x32xf32, #tpu.memory_space<vmem>>, vector<1x1x32xf32>
    %11 = vector.shape_cast %10 : vector<1x1x32xf32> to vector<1x32xf32>
    %12 = vector.broadcast %11 : vector<1x32xf32> to vector<32x32xf32>
    %13 = arith.addf %9, %12 : vector<32x32xf32>
    %14 = vector.extract_strided_slice %0 {offsets = [1, 0, 0], sizes = [1, 32, 32], strides = [1, 1, 1]} : vector<3x32x32xf32> to vector<1x32x32xf32>
    %15 = vector.shape_cast %14 : vector<1x32x32xf32> to vector<32x32xf32>
    %cst_14 = arith.constant dense<0.000000e+00> : vector<32x32xf32>
    %16 = tpu.matmul %4, %15, %cst_14 {dimension_numbers = #tpu.dot_dimension_numbers<[1], [0], [0], [1], [0, 0, 1, 1], [], []>} : vector<32x32xf32>, vector<32x32xf32>, vector<32x32xf32> -> vector<32x32xf32>
    %c1 = arith.constant 1 : index
    %c0_15 = arith.constant 0 : index
    %c0_16 = arith.constant 0 : index
    %17 = vector.load %arg5[%c1, %c0_15, %c0_16] : memref<3x1x32xf32, #tpu.memory_space<vmem>>, vector<1x1x32xf32>
    %18 = vector.shape_cast %17 : vector<1x1x32xf32> to vector<1x32xf32>
    %19 = vector.broadcast %18 : vector<1x32xf32> to vector<32x32xf32>
    %20 = arith.addf %16, %19 : vector<32x32xf32>
    %21 = vector.extract_strided_slice %0 {offsets = [2, 0, 0], sizes = [1, 32, 32], strides = [1, 1, 1]} : vector<3x32x32xf32> to vector<1x32x32xf32>
    %22 = vector.shape_cast %21 : vector<1x32x32xf32> to vector<32x32xf32>
    %cst_17 = arith.constant dense<0.000000e+00> : vector<32x32xf32>
    %23 = tpu.matmul %6, %22, %cst_17 {dimension_numbers = #tpu.dot_dimension_numbers<[1], [0], [0], [1], [0, 0, 1, 1], [], []>} : vector<32x32xf32>, vector<32x32xf32>, vector<32x32xf32> -> vector<32x32xf32>
    %c2 = arith.constant 2 : index
    %c0_18 = arith.constant 0 : index
    %c0_19 = arith.constant 0 : index
    %24 = vector.load %arg5[%c2, %c0_18, %c0_19] : memref<3x1x32xf32, #tpu.memory_space<vmem>>, vector<1x1x32xf32>
    %25 = vector.shape_cast %24 : vector<1x1x32xf32> to vector<1x32xf32>
    %26 = vector.broadcast %25 : vector<1x32xf32> to vector<32x32xf32>
    %27 = arith.addf %23, %26 : vector<32x32xf32>
    %28 = vector.extract_strided_slice %13 {offsets = [0, 0], sizes = [16, 32], strides = [1, 1]} : vector<32x32xf32> to vector<16x32xf32>
    %29 = vector.shape_cast %28 : vector<16x32xf32> to vector<16x4x8xf32>
    %30 = vector.extract_strided_slice %20 {offsets = [0, 0], sizes = [16, 32], strides = [1, 1]} : vector<32x32xf32> to vector<16x32xf32>
    %31 = vector.shape_cast %30 : vector<16x32xf32> to vector<16x4x8xf32>
    %32 = vector.extract_strided_slice %27 {offsets = [0, 0], sizes = [16, 32], strides = [1, 1]} : vector<32x32xf32> to vector<16x32xf32>
    %33 = vector.shape_cast %32 : vector<16x32xf32> to vector<16x4x8xf32>
    "tpu.trace_start"() <{level = 10 : i32, message = "qhd,khd->hqk"}> : () -> ()
    %cst_20 = arith.constant dense<0.000000e+00> : vector<4x16x16xf32>
    %34 = tpu.matmul %29, %31, %cst_20 {dimension_numbers = #tpu.dot_dimension_numbers<[2], [2], [0], [0], [0, 1, 0, 0, 1, 0], [1], [1]>} : vector<16x4x8xf32>, vector<16x4x8xf32>, vector<4x16x16xf32> -> vector<4x16x16xf32>
    "tpu.trace_stop"() : () -> ()
    %cst_21 = arith.constant dense<0xFF800000> : vector<4x16xf32>
    %35 = vector.multi_reduction <maximumf>, %34, %cst_21 [2] : vector<4x16x16xf32> to vector<4x16xf32>
    %36 = vector.shape_cast %35 : vector<4x16xf32> to vector<4x16x1xf32>
    %37 = vector.broadcast %36 : vector<4x16x1xf32> to vector<4x16x16xf32>
    %38 = arith.subf %34, %37 : vector<4x16x16xf32>
    %39 = math.exp %38 : vector<4x16x16xf32>
    %cst_22 = arith.constant dense<0.000000e+00> : vector<4x16xf32>
    %40 = vector.multi_reduction <add>, %39, %cst_22 [2] : vector<4x16x16xf32> to vector<4x16xf32>
    %41 = vector.shape_cast %40 : vector<4x16xf32> to vector<4x16x1xf32>
    %42 = tpu.reciprocal %41 {approx = true} : vector<4x16x1xf32> -> vector<4x16x1xf32>
    %43 = arith.mulf %41, %42 : vector<4x16x1xf32>
    %cst_23 = arith.constant 2.000000e+00 : f32
    %44 = vector.broadcast %cst_23 : f32 to vector<4x16x1xf32>
    %45 = arith.subf %44, %43 : vector<4x16x1xf32>
    %46 = arith.mulf %42, %45 : vector<4x16x1xf32>
    %47 = vector.broadcast %46 : vector<4x16x1xf32> to vector<4x16x16xf32>
    %48 = arith.mulf %39, %47 : vector<4x16x16xf32>
    "tpu.trace_start"() <{level = 10 : i32, message = "hqk,khd->hqd"}> : () -> ()
    %cst_24 = arith.constant dense<0.000000e+00> : vector<4x16x8xf32>
    %49 = tpu.matmul %48, %33, %cst_24 {dimension_numbers = #tpu.dot_dimension_numbers<[2], [0], [1], [2], [0, 0, 0, 1, 1, 2], [0], [1]>} : vector<4x16x16xf32>, vector<16x4x8xf32>, vector<4x16x8xf32> -> vector<4x16x8xf32>
    "tpu.trace_stop"() : () -> ()
    %50 = tpu.transpose %49, [1, 0, 2] : vector<4x16x8xf32> -> vector<16x4x8xf32>
    %51 = vector.shape_cast %50 : vector<16x4x8xf32> to vector<16x32xf32>
    %cst_25 = arith.constant dense<0.000000e+00> : vector<16x16xf32>
    %52 = vector.multi_reduction <add>, %48, %cst_25 [0] : vector<4x16x16xf32> to vector<16x16xf32>
    %cst_26 = arith.constant 2.500000e-01 : f32
    %53 = vector.broadcast %cst_26 : f32 to vector<16x16xf32>
    %54 = arith.mulf %52, %53 : vector<16x16xf32>
    %c0_27 = arith.constant 0 : index
    %c0_28 = arith.constant 0 : index
    %c0_29 = arith.constant 0 : index
    %55 = vector.load %arg9[%c0_27, %c0_28, %c0_29] : memref<2x16x16xf32, #tpu.memory_space<vmem>>, vector<1x16x16xf32>
    %56 = vector.shape_cast %55 : vector<1x16x16xf32> to vector<16x16xf32>
    %57 = vector.shape_cast %54 : vector<16x16xf32> to vector<1x16x16xf32>
    tpu.vector_store %arg9[%c0_27, %c0_28, %c0_29], %57 {strides = array<i32>} : memref<2x16x16xf32, #tpu.memory_space<vmem>>, vector<1x16x16xf32>,
    %58 = vector.extract_strided_slice %13 {offsets = [16, 0], sizes = [16, 32], strides = [1, 1]} : vector<32x32xf32> to vector<16x32xf32>
    %59 = vector.shape_cast %58 : vector<16x32xf32> to vector<16x4x8xf32>
    %60 = vector.extract_strided_slice %20 {offsets = [16, 0], sizes = [16, 32], strides = [1, 1]} : vector<32x32xf32> to vector<16x32xf32>
    %61 = vector.shape_cast %60 : vector<16x32xf32> to vector<16x4x8xf32>
    %62 = vector.extract_strided_slice %27 {offsets = [16, 0], sizes = [16, 32], strides = [1, 1]} : vector<32x32xf32> to vector<16x32xf32>
    %63 = vector.shape_cast %62 : vector<16x32xf32> to vector<16x4x8xf32>
    "tpu.trace_start"() <{level = 10 : i32, message = "qhd,khd->hqk"}> : () -> ()
    %cst_30 = arith.constant dense<0.000000e+00> : vector<4x16x16xf32>
    %64 = tpu.matmul %59, %61, %cst_30 {dimension_numbers = #tpu.dot_dimension_numbers<[2], [2], [0], [0], [0, 1, 0, 0, 1, 0], [1], [1]>} : vector<16x4x8xf32>, vector<16x4x8xf32>, vector<4x16x16xf32> -> vector<4x16x16xf32>
    "tpu.trace_stop"() : () -> ()
    %cst_31 = arith.constant dense<0xFF800000> : vector<4x16xf32>
    %65 = vector.multi_reduction <maximumf>, %64, %cst_31 [2] : vector<4x16x16xf32> to vector<4x16xf32>
    %66 = vector.shape_cast %65 : vector<4x16xf32> to vector<4x16x1xf32>
    %67 = vector.broadcast %66 : vector<4x16x1xf32> to vector<4x16x16xf32>
    %68 = arith.subf %64, %67 : vector<4x16x16xf32>
    %69 = math.exp %68 : vector<4x16x16xf32>
    %cst_32 = arith.constant dense<0.000000e+00> : vector<4x16xf32>
    %70 = vector.multi_reduction <add>, %69, %cst_32 [2] : vector<4x16x16xf32> to vector<4x16xf32>
    %71 = vector.shape_cast %70 : vector<4x16xf32> to vector<4x16x1xf32>
    %72 = tpu.reciprocal %71 {approx = true} : vector<4x16x1xf32> -> vector<4x16x1xf32>
    %73 = arith.mulf %71, %72 : vector<4x16x1xf32>
    %cst_33 = arith.constant 2.000000e+00 : f32
    %74 = vector.broadcast %cst_33 : f32 to vector<4x16x1xf32>
    %75 = arith.subf %74, %73 : vector<4x16x1xf32>
    %76 = arith.mulf %72, %75 : vector<4x16x1xf32>
    %77 = vector.broadcast %76 : vector<4x16x1xf32> to vector<4x16x16xf32>
    %78 = arith.mulf %69, %77 : vector<4x16x16xf32>
    "tpu.trace_start"() <{level = 10 : i32, message = "hqk,khd->hqd"}> : () -> ()
    %cst_34 = arith.constant dense<0.000000e+00> : vector<4x16x8xf32>
    %79 = tpu.matmul %78, %63, %cst_34 {dimension_numbers = #tpu.dot_dimension_numbers<[2], [0], [1], [2], [0, 0, 0, 1, 1, 2], [0], [1]>} : vector<4x16x16xf32>, vector<16x4x8xf32>, vector<4x16x8xf32> -> vector<4x16x8xf32>
    "tpu.trace_stop"() : () -> ()
    %80 = tpu.transpose %79, [1, 0, 2] : vector<4x16x8xf32> -> vector<16x4x8xf32>
    %81 = vector.shape_cast %80 : vector<16x4x8xf32> to vector<16x32xf32>
    %cst_35 = arith.constant dense<0.000000e+00> : vector<16x16xf32>
    %82 = vector.multi_reduction <add>, %78, %cst_35 [0] : vector<4x16x16xf32> to vector<16x16xf32>
    %cst_36 = arith.constant 2.500000e-01 : f32
    %83 = vector.broadcast %cst_36 : f32 to vector<16x16xf32>
    %84 = arith.mulf %82, %83 : vector<16x16xf32>
    %c1_37 = arith.constant 1 : index
    %c0_38 = arith.constant 0 : index
    %c0_39 = arith.constant 0 : index
    %85 = vector.load %arg9[%c1_37, %c0_38, %c0_39] : memref<2x16x16xf32, #tpu.memory_space<vmem>>, vector<1x16x16xf32>
    %86 = vector.shape_cast %85 : vector<1x16x16xf32> to vector<16x16xf32>
    %87 = vector.shape_cast %84 : vector<16x16xf32> to vector<1x16x16xf32>
    tpu.vector_store %arg9[%c1_37, %c0_38, %c0_39], %87 {strides = array<i32>} : memref<2x16x16xf32, #tpu.memory_space<vmem>>, vector<1x16x16xf32>,
    %88 = tpu.concatenate %51, %81 in 0 : vector<16x32xf32>, vector<16x32xf32> -> vector<32x32xf32>
    %c0_40 = arith.constant 0 : index
    %c0_41 = arith.constant 0 : index
    %89 = vector.load %arg6[%c0_40, %c0_41] : memref<32x32xf32, #tpu.memory_space<vmem>>, vector<32x32xf32>
    %cst_42 = arith.constant dense<0.000000e+00> : vector<32x32xf32>
    %90 = tpu.matmul %88, %89, %cst_42 {dimension_numbers = #tpu.dot_dimension_numbers<[1], [0], [0], [1], [0, 0, 1, 1], [], []>} : vector<32x32xf32>, vector<32x32xf32>, vector<32x32xf32> -> vector<32x32xf32>
    %c0_43 = arith.constant 0 : index
    %c0_44 = arith.constant 0 : index
    %91 = vector.load %arg7[%c0_43, %c0_44] : memref<1x32xf32, #tpu.memory_space<vmem>>, vector<1x32xf32>
    %92 = vector.broadcast %91 : vector<1x32xf32> to vector<32x32xf32>
    %93 = arith.addf %90, %92 : vector<32x32xf32>
    %94 = vector.shape_cast %93 : vector<32x32xf32> to vector<2x16x32xf32>
    %c0_45 = arith.constant 0 : index
    %c0_46 = arith.constant 0 : index
    %c0_47 = arith.constant 0 : index
    %95 = vector.load %arg8[%c0_45, %c0_46, %c0_47] : memref<2x16x32xf32, #tpu.memory_space<vmem>>, vector<2x16x32xf32>
    tpu.vector_store %arg8[%c0_45, %c0_46, %c0_47], %94 {strides = array<i32>} : memref<2x16x32xf32, #tpu.memory_space<vmem>>, vector<2x16x32xf32>,
    return
  }
  func.func @transform_0(%arg0: i32) -> (i32, i32, i32) {
    %c0_i32 = arith.constant 0 : i32
    %c0_i32_0 = arith.constant 0 : i32
    %c0_i32_1 = arith.constant 0 : i32
    return %arg0, %c0_i32, %c0_i32_0 : i32, i32, i32
  }
  func.func @transform_1(%arg0: i32) -> (i32, i32, i32) {
    %c0_i32 = arith.constant 0 : i32
    %c0_i32_0 = arith.constant 0 : i32
    %c0_i32_1 = arith.constant 0 : i32
    return %arg0, %c0_i32, %c0_i32_0 : i32, i32, i32
  }
  func.func @transform_2(%arg0: i32) -> (i32, i32, i32) {
    %c0_i32 = arith.constant 0 : i32
    %c0_i32_0 = arith.constant 0 : i32
    %c0_i32_1 = arith.constant 0 : i32
    return %arg0, %c0_i32, %c0_i32_0 : i32, i32, i32
  }
  func.func @transform_3(%arg0: i32) -> (i32, i32, i32) {
    %c0_i32 = arith.constant 0 : i32
    %c0_i32_0 = arith.constant 0 : i32
    %c0_i32_1 = arith.constant 0 : i32
    %c0_i32_2 = arith.constant 0 : i32
    return %c0_i32, %c0_i32_0, %c0_i32_1 : i32, i32, i32
  }
  func.func @transform_4(%arg0: i32) -> (i32, i32, i32) {
    %c0_i32 = arith.constant 0 : i32
    %c0_i32_0 = arith.constant 0 : i32
    %c0_i32_1 = arith.constant 0 : i32
    %c0_i32_2 = arith.constant 0 : i32
    return %c0_i32, %c0_i32_0, %c0_i32_1 : i32, i32, i32
  }
  func.func @transform_5(%arg0: i32) -> (i32, i32) {
    %c0_i32 = arith.constant 0 : i32
    %c0_i32_0 = arith.constant 0 : i32
    %c0_i32_1 = arith.constant 0 : i32
    return %c0_i32, %c0_i32_0 : i32, i32
  }
  func.func @transform_6(%arg0: i32) -> (i32, i32) {
    %c0_i32 = arith.constant 0 : i32
    %c0_i32_0 = arith.constant 0 : i32
    %c0_i32_1 = arith.constant 0 : i32
    return %c0_i32, %c0_i32_0 : i32, i32
  }
  func.func @transform_7(%arg0: i32) -> (i32, i32, i32) {
    %c0_i32 = arith.constant 0 : i32
    %c0_i32_0 = arith.constant 0 : i32
    %c0_i32_1 = arith.constant 0 : i32
    return %arg0, %c0_i32, %c0_i32_0 : i32, i32, i32
  }
  func.func @transform_8(%arg0: i32) -> (i32, i32, i32) {
    %c0_i32 = arith.constant 0 : i32
    %c0_i32_0 = arith.constant 0 : i32
    %c0_i32_1 = arith.constant 0 : i32
    return %arg0, %c0_i32, %c0_i32_0 : i32, i32, i32
  }
}

</mosaic_0001>

<bundles_post_ra>
// kernel: tpu_custom_call.1
= control target key start
LH: loop header
LB: loop body
LE: loop exit
PB: predicated region body
PF: predicated region fallthrough
CT: control target
= control target key end

     0   :  { %s5400_s0 = inlined_call_operand.hbm [shape: f32[4,16,32], index: 0, kind: input, shape index: {}]   ;;  %s5401_s1 = inlined_call_operand.hbm [shape: f32[4,16,32], index: 1, kind: input, shape index: {}]   ;;  %s5402_s2 = inlined_call_operand.hbm [shape: f32[4,16,32], index: 2, kind: input, shape index: {}]   ;;  %s5403_s3 = inlined_call_operand.hbm [shape: f32[3,32,32], index: 3, kind: input, shape index: {}]   ;;  %s5404_s4 = inlined_call_operand.vmem [shape: f32[3,1,32], index: 4, kind: input, shape index: {}]   ;;  %s5405_s5 = inlined_call_operand.hbm [shape: f32[32,32], index: 5, kind: input, shape index: {}]   ;;  %s5406_s6 = inlined_call_operand.vmem [shape: f32[1,32], index: 6, kind: input, shape index: {}]   ;;  %s5407_s7 = inlined_call_operand.hbm [shape: f32[4,16,32], index: 7, kind: output, shape index: {0}]   ;;  %s5408_s8 = inlined_call_operand.hbm [shape: f32[4,16,16], index: 8, kind: output, shape index: {1}]  }
   0x1   :  { %5431 = sst [smem:[#allocation24_spill]] %s5401_s1 }
   0x2   :  { %5432 = sst [smem:[#allocation25_spill]] %s5403_s3 }
   0x3   :  { %5433 = sst [smem:[#allocation26_spill]] %s5407_s7 }
   0x4   :  { %14 = vsyncpa [#allocation3], 0 }
   0x5   :  { %16 = vsyncpa [#allocation3 + $0x1], 0 }
   0x6   :  { %17 = vsyncpa [#allocation6], 0 }
   0x7   :  { %19 = vsyncpa [#allocation6 + $0x1], 0 }
   0x8   :  { %20 = vsyncpa [#allocation9], 0 }
   0x9   :  { %21 = vsyncpa [#allocation4], 0 }
   0xa   :  { %23 = vsyncpa [#allocation4 + $0x1], 0 }
   0xb   :  { %24 = vsyncpa [#allocation13], 0 }
   0xc   :  { %26 = vsyncpa [#allocation13 + $0x1], 0  ;;  %s4534_s27 = smov 0   ;;  %s4536_s28 = smov 0  }
   0xd   :  { %s4538_s29 = smov 0   ;;  %s4540_s30 = smov 0  }
   0xe LB: > { %5434 = sst [smem:[#allocation19_spill]] %s4457_s27  ;;  %s4555_s9 = sadd.s32 4294967295, %s4469_s30   ;;  %s4469_s30 = sphi %s4540_s30, %s5471_s30   ;;  %s4465_s29 = sphi %s4538_s29, %s5475_s29   ;;  %s4461_s28 = sphi %s4536_s28, %s5474_s28   ;;  %s4457_s27 = sphi %s4534_s27, %s5473_s27  }
   0xf   : > { %5435 = sst [smem:[#allocation20_spill]] %s4469_s30  ;;  %s3616_s10 = sadd.s32 4294967294, %s4469_s30  }
  0x10   : > { %s4559_s11 = sadd.s32 1, %s4469_s30   ;;  %s39_s12 = sadd.s32 1, %s4465_s29 }
  0x11   : > { %5436 = sst [smem:[#allocation21_spill]] %s4559_s11  ;;  %s36_s13 = ssub.s32 %s4469_s30, %s4559_s11 }
  0x12   : > { %p46_p0 = scmp.ne.s32.totalorder %s4465_s29, %s4461_s28  ;;  %p37_p1 = scmp.eq.s32.totalorder %s36_s13, 0 }
  0x13   : > { %p47_p2 = scmp.eq.s32.totalorder %s4469_s30, 0  ;;  %p52_p3 = scmp.ne.s32.totalorder %s4461_s28, %s4457_s27 }
  0x14   : > { %p5410_p4 = scmp.eq.s32.totalorder %s4555_s9, 0  ;;  %p212_p7 = scmp.eq.s32.totalorder %s4555_s9, 1 }
  0x15   : > { %s4571_s14 = scalar_select %p37_p1, %s4465_s29, %s39_s12  }
  0x16   : > { %p4573_p5 = por %p47_p2, %p46_p0  ;;  %p4579_p6 = por %p5410_p4, %p52_p3 }
  0x17   : > { %5437 = sst [smem:[#allocation22_spill]] %s4571_s14  ;;  %p218_p8 = scmp.eq.s32.totalorder %s3616_s10, 1 }
  0x18   : > { %s5438_s15 = scalar_select %p4573_p5, 1, 0 }
  0x19   : > { %s5439_s16 = scalar_select %p4579_p6, 1, 0 }
  0x1a   : > { %p3617_p9 = scmp.ge.s32.totalorder %s4469_s30, 1  ;;  %p251_p10 = scmp.lt.s32.totalorder %s4469_s30, 3 }
  0x1b   : > { %p4586_p11 = por %p212_p7, %p46_p0  ;;  %p4590_p12 = por %p218_p8, %p52_p3 }
  0x1c   : > { %p4594_p13 = pnand %p3617_p9, %p251_p10  ;;  %s4471_s20 = smov [#allocation8]  }
  0x1d   : > { %s5440_s17 = scalar_select %p4586_p11, 1, 0 }
  0x1e   : > { %s5441_s18 = scalar_select %p4590_p12, 1, 0 }
  0x1f   : > { %s5443_s19 = scalar_select %p4594_p13, 1, 0 }
  0x20   : > { %5442 = sst [smem:[#allocation23_spill]] %s5441_s18  ;;  %p4047_p1 = pneg %p4594_p13 }
  0x21   : > { %s263_s21 = sshll.u32 %s4471_s20, 4  ;;  %s5409_s23 = sand.u32 1, %s4465_s29   ;;  %s264_s21 = int_to_ptr.vmem [resolvable:$true] %s263_s21 }
  0x22   : > { %p4602_p2 = pnand %p4047_p1, %p5410_p4  ;;  %s4611_s24 = sshll.u32 %s5409_s23, 5 }
  0x23   : > { %s5445_s3 = sld [smem:[#allocation25_spill]] }
  0x24   : > { %s5444_s22 = scalar_select %p4602_p2, 1, 0 }
  0x25   : > { %p5421_p8 = pneg %p4602_p2 }
  0x29   : > { %s4217_s10 = scalar_lea.hbm %s5445_s3, 1536 }
  0x2a   : > { %p4218_p7 = scmp.ne.s32.totalorder %s5445_s3, %s4217_s10  ;;  %p4224_p1 = scmp.lt.u32.totalorder %s4217_s10, %s5445_s3 }
  0x2c   : > { %p4220_p9 = pnand %p5421_p8, %p4218_p7 }
  0x2e   : > { %p4221_p10 = pneg %p4220_p9 }
  0x30   : > { %p4226_p0 = pnand %p4224_p1, %p4221_p10 }
  0x32   : > { %4229 = shalt.err (!%p4226_p0)
}
  0x33   : > { %s4230_s23 = scalar_lea.vmem %s264_s21, 1536  ;;  %p4238_p11 = scmp.lt.s32.totalorder %s264_s21, %s264_s21 }
  0x34   : > { %p4231_p4 = scmp.ne.s32.totalorder %s264_s21, %s4230_s23  ;;  %p4239_p6 = scmp.lt.s32.totalorder %s4230_s23, %s4230_s23 }
  0x36   : > { %p4233_p3 = pnand %p4231_p4, %p5421_p8  ;;  %p4240_p13 = por %p4239_p6, %p4238_p11 }
  0x38   : > { %p4234_p12 = pneg %p4233_p3 }
  0x3a   : > { %p4241_p5 = pnand %p4240_p13, %p4234_p12 }
  0x3c   : > { %4244 = shalt.err (!%p4241_p5)
}
  0x3d   : > { %s5417_s25 = smov 128   ;;  %s5419_s14 = smov 8  }
  0x3e   : > { %4050 = dma.hbm_to_vmem [thread:$0]  (!%p4602_p2), %s5445_s3, 1536, %s264_s21, [#allocation9], %s5417_s25, %s5417_s25, %s5419_s14  }
  0x3f   : > { %s4639_s23 = sshll.u32 %s4469_s30, 9  ;;  %p5446_p4 = scmp.ne.s32.totalorder %s5438_s15, 0 }
  0x40   : > { %p5447_p5 = scmp.lt.s32.totalorder %s4469_s30, 2  ;;  %s318_s13 = sand.u32 1, %s4469_s30  }
  0x41   : > { %s5449_s1 = sld [smem:[#allocation24_spill]]  ;;  %s322_s21 = scalar_lea.vmem [#allocation5], %s4611_s24 }
  0x42   : > { %p4645_p6 = pnand %p5447_p5, %p5446_p4  ;;  %s330_s26 = sshll.u32 %s322_s21, 4  ;;  %s4657_s26 = int_to_ptr.vmem [resolvable:$true] %s330_s26 }
  0x43   : > { %s4659_s15 = scalar_lea.sflag [#allocation6], %s318_s13 }
  0x44   : > { %s5448_s12 = scalar_select %p4645_p6, 1, 0 }
  0x45   : > { %p4665_p12 = pneg %p4645_p6 }
  0x47   : > { %s4654_s18 = scalar_lea.hbm %s5449_s1, %s4639_s23  ;;  %s4250_s14 = scalar_lea.hbm %s5449_s1, 1024 }
  0x48   : > { %s4245_s10 = scalar_lea.hbm %s4654_s18, 512  ;;  %p4251_p3 = scmp.lt.u32.totalorder %s4654_s18, %s5449_s1 }
  0x49   : > { %p4246_p11 = scmp.ne.s32.totalorder %s4654_s18, %s4245_s10  ;;  %p4252_p7 = scmp.lt.u32.totalorder %s4250_s14, %s4245_s10 }
  0x4a   : > { %s5450_s25 = scalar_select %p4665_p12, 1, 0 }
  0x4b   : > { %p4248_p13 = pnand %p4665_p12, %p4246_p11  ;;  %p4253_p9 = por %p4252_p7, %p4251_p3 }
  0x4c   : > { %p4254_p10 = scmp.lt.u32.totalorder %s4245_s10, %s4654_s18 }
  0x4d   : > { %p4249_p0 = pneg %p4248_p13 }
  0x4e   : > { %p4255_p1 = por %p4254_p10, %p4253_p9 }
  0x50   : > { %p4256_p4 = pnand %p4255_p1, %p4249_p0 }
  0x52   : > { %4259 = shalt.err (!%p4256_p4)
}
  0x53   : > { %s4260_s13 = scalar_lea.vmem %s4657_s26, 512  ;;  %s4474_s11 = smov [#allocation5]  }
  0x54   : > { %p4261_p5 = scmp.ne.s32.totalorder %s4657_s26, %s4260_s13  ;;  %s4265_s20 = sshll.u32 %s4474_s11, 4  ;;  %s4266_s20 = int_to_ptr.vmem [resolvable:$false] %s4265_s20 }
  0x55   : > { %s4267_s3 = scalar_lea.vmem %s4266_s20, 1024  ;;  %p4268_p8 = scmp.lt.s32.totalorder %s4657_s26, %s4266_s20 }
  0x56   : > { %p4263_p11 = pnand %p4261_p5, %p4665_p12  ;;  %p4269_p2 = scmp.lt.s32.totalorder %s4267_s3, %s4260_s13 }
  0x58   : > { %p4264_p13 = pneg %p4263_p11  ;;  %p4270_p3 = por %p4269_p2, %p4268_p8 }
  0x5a   : > { %p4271_p7 = pnand %p4270_p3, %p4264_p13 }
  0x5c   : > { %4274 = shalt.err (!%p4271_p7)
}
  0x5d   : > { %s5451_s14 = smov 8   ;;  %s5452_s10 = smov 128  }
  0x5e   : > { %4060 = dma.hbm_to_vmem [thread:$0]  (!%p4645_p6), %s4654_s18, 512, %s4657_s26, %s4659_s15, %s5452_s10, %s5452_s10, %s5451_s14  }
  0x5f   : > { %s4475_s21 = smov [#allocation10]   ;;  %s4275_s13 = scalar_lea.hbm %s5405_s5, 512 }
  0x60   : > { %s279_s1 = sshll.u32 %s4475_s21, 4  ;;  %p4276_p2 = scmp.ne.s32.totalorder %s5405_s5, %s4275_s13  ;;  %s280_s1 = int_to_ptr.vmem [resolvable:$true] %s279_s1 }
  0x61   : > { %p5453_p8 = scmp.ne.s32.totalorder %s5444_s22, 0  ;;  %p4282_p1 = scmp.lt.u32.totalorder %s4275_s13, %s5405_s5 }
  0x63   : > { %p5454_p0 = pneg %p5453_p8 }
  0x65   : > { %p4278_p9 = pnand %p4276_p2, %p5454_p0 }
  0x67   : > { %p4279_p10 = pneg %p4278_p9 }
  0x69   : > { %p4284_p4 = pnand %p4282_p1, %p4279_p10 }
  0x6b   : > { %4287 = shalt.err (!%p4284_p4)
}
  0x6c   : > { %s4288_s18 = scalar_lea.vmem %s280_s1, 512  ;;  %p5455_p11 = pmov %p5454_p0 }
  0x6d   : > { %p4289_p5 = scmp.ne.s32.totalorder %s280_s1, %s4288_s18  ;;  %p4296_p7 = scmp.lt.s32.totalorder %s280_s1, %s280_s1 }
  0x6e   : > { %p4297_p6 = scmp.lt.s32.totalorder %s4288_s18, %s4288_s18 }
  0x6f   : > { %p4291_p13 = pnand %p4289_p5, %p5455_p11 }
  0x70   : > { %p4298_p12 = por %p4297_p6, %p4296_p7 }
  0x71   : > { %p4292_p3 = pneg %p4291_p13 }
  0x73   : > { %p4299_p0 = pnand %p4298_p12, %p4292_p3 }
  0x75   : > { %4302 = shalt.err (!%p4299_p0)
}
  0x76   : > { %4053 = dma.hbm_to_vmem [thread:$0]  (!%p5453_p8), %s5405_s5, 512, %s280_s1, [#allocation9], %s5452_s10, %s5452_s10, %s5451_s14  }
  0x77   : > { %s4719_s21 = scalar_lea.hbm %s5400_s0, %s4639_s23  ;;  %s300_s22 = scalar_lea.vmem [#allocation2], %s4611_s24 }
  0x78   : > { %s308_s11 = sshll.u32 %s300_s22, 4  ;;  %s5456_s13 = sand.u32 1, %s4465_s29   ;;  %s4722_s11 = int_to_ptr.vmem [resolvable:$true] %s308_s11 }
  0x79   : > { %s4726_s20 = scalar_lea.sflag [#allocation3], %s5456_s13  ;;  %s4303_s3 = scalar_lea.hbm %s4719_s21, 512 }
  0x7a   : > { %p4304_p6 = scmp.ne.s32.totalorder %s4719_s21, %s4303_s3  ;;  %p5457_p12 = scmp.ne.s32.totalorder %s5450_s25, 0 }
  0x7b   : > { %s4308_s7 = scalar_lea.hbm %s5400_s0, 1024  ;;  %p4309_p9 = scmp.lt.u32.totalorder %s4719_s21, %s5400_s0 }
  0x7c   : > { %p4306_p2 = pnand %p4304_p6, %p5457_p12  ;;  %p4310_p10 = scmp.lt.u32.totalorder %s4308_s7, %s4303_s3 }
  0x7d   : > { %p4312_p4 = scmp.lt.u32.totalorder %s4303_s3, %s4719_s21 }
  0x7e   : > { %p4307_p8 = pneg %p4306_p2  ;;  %p4311_p1 = por %p4310_p10, %p4309_p9 }
  0x80   : > { %p4313_p5 = por %p4312_p4, %p4311_p1 }
  0x82   : > { %p4314_p11 = pnand %p4313_p5, %p4307_p8 }
  0x84   : > { %4317 = shalt.err (!%p4314_p11)
}
  0x85   : > { %s4318_s26 = scalar_lea.vmem %s4722_s11, 512  ;;  %s4476_s22 = smov [#allocation2]  }
  0x86   : > { %p4319_p13 = scmp.ne.s32.totalorder %s4722_s11, %s4318_s26  ;;  %s4323_s13 = sshll.u32 %s4476_s22, 4  ;;  %s4324_s13 = int_to_ptr.vmem [resolvable:$false] %s4323_s13 }
  0x87   : > { %s4325_s1 = scalar_lea.vmem %s4324_s13, 1024  ;;  %p4326_p0 = scmp.lt.s32.totalorder %s4722_s11, %s4324_s13 }
  0x88   : > { %p4321_p3 = pnand %p4319_p13, %p5457_p12  ;;  %p4327_p6 = scmp.lt.s32.totalorder %s4325_s1, %s4318_s26 }
  0x8a   : > { %p4322_p7 = pneg %p4321_p3  ;;  %p4328_p2 = por %p4327_p6, %p4326_p0 }
  0x8c   : > { %p4329_p9 = pnand %p4328_p2, %p4322_p7 }
  0x8e   : > { %4332 = shalt.err (!%p4329_p9)
}
  0x8f   : > { %p5458_p8 = scmp.ne.s32.totalorder %s5448_s12, 0  ;;  %s4757_s7 = scalar_lea.hbm %s5402_s2, %s4639_s23 }
  0x90   : > { %s344_s27 = scalar_lea.vmem [#allocation7], %s4611_s24  ;;  %s4333_s26 = scalar_lea.hbm %s4757_s7, 512 }
  0x91   : > { %4057 = dma.hbm_to_vmem [thread:$0]  (!%p5458_p8), %s4719_s21, 512, %s4722_s11, %s4726_s20, %s5452_s10, %s5452_s10, %s5451_s14  }
  0x92   : > { %s352_s30 = sshll.u32 %s344_s27, 4  ;;  %p4334_p10 = scmp.ne.s32.totalorder %s4757_s7, %s4333_s26  ;;  %s4760_s30 = int_to_ptr.vmem [resolvable:$true] %s352_s30 }
  0x93   : > { %s4338_s11 = scalar_lea.hbm %s5402_s2, 1024  ;;  %p4339_p5 = scmp.lt.u32.totalorder %s4757_s7, %s5402_s2 }
  0x94   : > { %p4336_p1 = pnand %p4334_p10, %p5457_p12  ;;  %p4340_p11 = scmp.lt.u32.totalorder %s4338_s11, %s4333_s26 }
  0x95   : > { %p4342_p3 = scmp.lt.u32.totalorder %s4333_s26, %s4757_s7 }
  0x96   : > { %p4337_p4 = pneg %p4336_p1  ;;  %p4341_p13 = por %p4340_p11, %p4339_p5 }
  0x98   : > { %p4343_p7 = por %p4342_p3, %p4341_p13 }
  0x9a   : > { %p4344_p0 = pnand %p4343_p7, %p4337_p4 }
  0x9c   : > { %4347 = shalt.err (!%p4344_p0)
}
  0x9d   : > { %s4348_s24 = scalar_lea.vmem %s4760_s30, 512  ;;  %s4477_s13 = smov [#allocation7]  }
  0x9e   : > { %p4349_p6 = scmp.ne.s32.totalorder %s4760_s30, %s4348_s24  ;;  %s4353_s1 = sshll.u32 %s4477_s13, 4  ;;  %s4354_s1 = int_to_ptr.vmem [resolvable:$false] %s4353_s1 }
  0x9f   : > { %s4355_s3 = scalar_lea.vmem %s4354_s1, 1024  ;;  %p4356_p10 = scmp.lt.s32.totalorder %s4760_s30, %s4354_s1 }
  0xa0   : > { %p4351_p2 = pnand %p4349_p6, %p5457_p12  ;;  %p4357_p1 = scmp.lt.s32.totalorder %s4355_s3, %s4348_s24 }
  0xa2   : > { %p4352_p9 = pneg %p4351_p2  ;;  %p4358_p5 = por %p4357_p1, %p4356_p10 }
  0xa4   : > { %p4359_p11 = pnand %p4358_p5, %p4352_p9 }
  0xa6   : > { %4362 = shalt.err (!%p4359_p11)
}
  0xa7   : > { %4063 = dma.hbm_to_vmem [thread:$0]  (!%p5458_p8), %s4757_s7, 512, %s4760_s30, %s4659_s15, %s5452_s10, %s5452_s10, %s5451_s14  }
  0xa8   : > { %p5459_p12 = scmp.ne.s32.totalorder %s5443_s19, 0 }
  0xa9   : > { %s4790_s25 = sand.u32 (!%p5459_p12), 1, %s4461_s28   ;;  %p5460_p4 = scmp.ne.s32.totalorder (!%p5459_p12), %s5439_s16, 0 }
  0xaa   : > { %364 = sbr.rel (%p5459_p12) target bundleno = 2420 (0x974), region = 48  ;;  %s4793_s18 = sshll.u32 (!%p5459_p12), %s4790_s25, 5 }
  0xab   : > { %s367_s12 = scalar_lea.sflag (!%p5459_p12), [#allocation3], %s4790_s25  ;;  %s4797_s27 = scalar_lea.vmem (!%p5459_p12), [#allocation2], %s4793_s18 }
  0xb1   : > { %4436 = dma.done.wait (%p5460_p4), %s367_s12, 512  }
  0xb2   : > { %4438 = vsyncadd (%p5460_p4), %s367_s12, 4294966784  ;;  %s375_s19 = sand.u32 1, %s4555_s9   ;;  %s4805_s14 = scalar_lea.vmem [#allocation5], %s4793_s18 }
  0xb3   : > { %s376_s15 = scalar_lea.sflag [#allocation6], %s375_s19 }
  0xb4   : > { %4440 = dma.done.wait (%p5460_p4), %s376_s15, 1024  }
  0xb5   : > { %4442 = vsyncadd (%p5460_p4), %s376_s15, 4294966272  ;;  %s4812_s10 = scalar_lea.vmem [#allocation7], %s4793_s18  ;;  %p5461_p8 = scmp.eq.s32.totalorder %s4555_s9, 0 }
  0xb7   : > { %4444 = dma.done.wait (%p5461_p8), [#allocation9], 2048   ;;  %p5462_p13 = pmov %p5461_p8 }
  0xb8   : > { %vm480_vm0 = vcmask 261120   ;;  %v449_v0 = vld [vmem:[#allocation8] sm:$0xff]  ;;  %v450_v1 = vld [vmem:[#allocation8 + $0x8] sm:$0xff]  ;;  %v451_v2 = vld [vmem:[#allocation8 + $0x10] sm:$0xff]  ;;  %vm970_vm1 = vcmask 64512   ;;  %s4478_s22 = smov 104  }
  0xb9   : > { %4446 = vsyncadd (%p5462_p13), [#allocation9], 4294965248  ;;  %v3965_v3 = vpack.c.bf16 %v450_v1, %v449_v0  ;;  %v452_v4 = vld [vmem:[#allocation8 + $0x18] sm:$0xff]  ;;  %v461_v5 = vld [vmem:[%s4797_s27] sm:$0xff]  ;;  %s4479_s21 = smov 120   ;;  %s4480_s11 = smov 112  }
  0xba   : > { %v3969_v6 = vpack.c.bf16 %v452_v4, %v451_v2  ;;  %3821 = vmatprep.mubr.msk.f32.mxu1 %vm480_vm0, %v461_v5  ;;  %v453_v7 = vld [vmem:[#allocation8 + $0x20] sm:$0xff]  ;;  %v454_v8 = vld [vmem:[#allocation8 + $0x28] sm:$0xff]  ;;  %v455_v10 = vld [vmem:[#allocation8 + $0x30] sm:$0xff]  ;;  %vm1287_vm2 = vcmask 130048   ;;  %s5027_s24 = scalar_lea.vmem [#allocation12], %s4793_s18  ;;  %s4483_s13 = smov 8  }
  0xbb   : > { %3966 = vmatprep.subr.bf16.mxu1 %v3965_v3  ;;  %v3973_v9 = vpack.c.bf16 %v454_v8, %v453_v7  ;;  %v456_v11 = vld [vmem:[#allocation8 + $0x38] sm:$0xff]  ;;  %v462_v12 = vld [vmem:[%s4797_s27 + $0x8] sm:$0xff]  ;;  %v463_v13 = vld [vmem:[%s4797_s27 + $0x10] sm:$0xff]  ;;  %s4484_s1 = smov 16   ;;  %s4485_s3 = smov 24   ;;  %vm2024_vm3 = vcmask 195584  }
  0xbc   : > { %3968 = vmatpush3.bf16.msra.mxu1 %v3965_v3  ;;  %v3977_v14 = vpack.c.bf16 %v456_v11, %v455_v10  ;;  %v464_v15 = vld [vmem:[%s4797_s27 + $0x18] sm:$0xff]  ;;  %v465_v16 = vld [vmem:[%s4805_s14] sm:$0xff]  ;;  %v466_v17 = vld [vmem:[%s4805_s14 + $0x8] sm:$0xff]  ;;  %s5249_s19 = scalar_lea.vmem [#allocation11], %s4793_s18  ;;  %s3722_s18 = sshll.u32 %s4555_s9, 9 }
  0xbd   : > { %3970 = vmatprep.subr.bf16.mxu1 %v3969_v6  ;;  %v467_v18 = vld [vmem:[%s4805_s14 + $0x10] sm:$0xff]  ;;  %v468_v19 = vld [vmem:[%s4805_s14 + $0x18] sm:$0xff]  ;;  %v457_v20 = vld [vmem:[#allocation8 + $0x40] sm:$0xff]  ;;  %s3449_s16 = sshll.u32 %s5027_s24, 4  ;;  %s3418_s7 = scalar_lea.sflag [#allocation13], %s4790_s25  ;;  %s5310_s16 = int_to_ptr.vmem [resolvable:$true] %s3449_s16 }
  0xbe   : > { %v458_v21 = vld [vmem:[#allocation8 + $0x48] sm:$0xff]  ;;  %v3641_v23 = vld [vmem:[%s5404_s4] ss:$0 sm:$0xff]  ;;  %v459_v27 = vld [vmem:[#allocation8 + $0x50] sm:$0xff]  ;;  %s4363_s30 = scalar_lea.vmem %s5310_s16, 512  ;;  %p5463_p7 = scmp.ne.s32.totalorder %s5440_s17, 0 }
  0xbf   : > { %v3981_v22 = vpack.c.bf16 %v458_v21, %v457_v20  ;;  %v460_v28 = vld [vmem:[#allocation8 + $0x58] sm:$0xff]  ;;  %v3647_v34 = vld [vmem:[%s5404_s4 + $0x1] ss:$0 sm:$0xff]  ;;  %v470_v36 = vld [vmem:[%s4812_s10 + $0x8] sm:$0xff]  ;;  %p4364_p3 = scmp.ne.s32.totalorder %s5310_s16, %s4363_s30  ;;  %s4486_s26 = smov [#allocation12]  }
  0xc0   : > { %3972 = vmatpush3.bf16.msra.mxu1 %v3969_v6  ;;  %v3985_v29 = vpack.c.bf16 %v460_v28, %v459_v27  ;;  %v469_v35 = vld [vmem:[%s4812_s10] sm:$0xff]  ;;  %v471_v40 = vld [vmem:[%s4812_s10 + $0x10] sm:$0xff]  ;;  %v472_v41 = vld [vmem:[%s4812_s10 + $0x18] sm:$0xff]  ;;  %s5307_s10 = scalar_lea.hbm %s5408_s8, %s3722_s18 }
  0xc1   : > { %3974 = vmatprep.subr.bf16.mxu1 %v3973_v9  ;;  %3982 = vmatprep.subr.bf16.mxu0 %v3981_v22  ;;  %v3653_v58 = vld [vmem:[%s5404_s4 + $0x2] ss:$0 sm:$0xff]  ;;  %p4365_p0 = pnand %p4364_p3, %p5463_p7 }
  0xc2   : > { %3984 = vmatpush3.bf16.msra.mxu0 %v3981_v22  ;;  %3849 = vmatprep.mubr.msk.f32.mxu0 %vm480_vm0, %v469_v35 }
  0xc3   : > { %3822 = vmatmul.mubr.msk.f32.vlgmr.msra.gmra.mrb[0].mxu1 %vm480_vm0, %v462_v12  ;;  %3986 = vmatprep.subr.bf16.mxu0 %v3985_v29  ;;  %p4366_p6 = pneg %p4365_p0 }
  0xc4   : > { %3976 = vmatpush3.bf16.msra.mxu1 %v3973_v9  ;;  %3824 = vmatprep.mubr.msk.f32.mxu1 %vm480_vm0, %v463_v13 }
  0xc5   : > { %3978 = vmatprep.subr.bf16.mxu1 %v3977_v14 }
  0xc6   : > { %3988 = vmatpush3.bf16.msra.mxu0 %v3985_v29 }
  0xc7   : > { %3825 = vmatmul.mubr.msk.f32.gmra.mrb[2].mxu1 %vm480_vm0, %v464_v15 }
  0xc8   : > { %3980 = vmatpush3.bf16.msra.mxu1 %v3977_v14  ;;  %3835 = vmatprep.mubr.msk.f32.mxu1 %vm480_vm0, %v465_v16 }
  0xc9   : > { %3850 = vmatmul.mubr.msk.f32.vlgmr.msra.gmra.mrb[0].mxu0 %vm480_vm0, %v470_v36 }
  0xca   : > { %3852 = vmatprep.mubr.msk.f32.mxu0 %vm480_vm0, %v471_v40 }
  0xcb   : > { %3836 = vmatmul.mubr.msk.f32.vlgmr.msra.gmra.mrb[4].mxu1 %vm480_vm0, %v466_v17 }
  0xcc   : > { %3838 = vmatprep.mubr.msk.f32.mxu1 %vm480_vm0, %v467_v18 }
  0xcd   : > { %3853 = vmatmul.mubr.msk.f32.gmra.mrb[2].mxu0 %vm480_vm0, %v472_v41 }
  0xcf   : > { %3839 = vmatmul.mubr.msk.f32.gmra.mrb[6].mxu1 %vm480_vm0, %v468_v19 }
 0x196   : > { %v3823_v24 = vpop.f32.mrb[0].mxu1 }
 0x197   : > { %v559_v25 = vpop.f32.mrb[1].mxu1  ;;  %v565_v43 = vadd.f32 %v3823_v24, %v3641_v23 }
 0x198   : > { %v560_v26 = vadd.f32 %v3641_v23, %v559_v25 }
 0x19a   : > { %v3826_v30 = vpop.f32.mrb[2].mxu1  ;;  %3857 = vmatprep.mubr.msk.f32.mxu1 %vm970_vm1, %v560_v26 }
 0x19b   : > { %v4838_v31 = vadd.f32 %v3826_v30, %v3641_v23  ;;  %v569_v32 = vpop.f32.mrb[3].mxu1 }
 0x19c   : > { %v4840_v33 = vadd.f32 %v3641_v23, %v569_v32  ;;  %v3851_v59 = vpop.f32.mrb[0].mxu0 }
 0x19d   : > { %v775_v60 = vadd.f32 %v3851_v59, %v3653_v58  ;;  %v769_v61 = vpop.f32.mrb[1].mxu0 }
 0x19e   : > { %v3837_v37 = vpop.f32.mrb[4].mxu1  ;;  %v770_v62 = vadd.f32 %v3653_v58, %v769_v61 }
 0x19f   : > { %v670_v38 = vadd.f32 %v3837_v37, %v3647_v34  ;;  %v664_v39 = vpop.f32.mrb[5].mxu1 }
 0x1a0   : > { %v665_v42 = vadd.f32 %v3647_v34, %v664_v39  ;;  %v4887_v63 = vpack.i.bf16 %v775_v60, %v770_v62  ;;  %v3989_v6 = vpack.c.bf16 %v775_v60, %v770_v62  ;;  %v3854_v7 = vpop.f32.mrb[2].mxu0 }
 0x1a1   : > { %818 = vrot.lane.b32.xlu1 %v670_v38, %s4478_s22  ;;  %806 = vrot.lane.b32.xlu0 %v670_v38, %s4479_s21  ;;  %v785_v8 = vadd.f32 %v3854_v7, %v3653_v58  ;;  %v779_v9 = vpop.f32.mrb[3].mxu0 }
 0x1a2   : > { %v3840_v52 = vpop.f32.mrb[6].mxu1  ;;  %v780_v10 = vadd.f32 %v3653_v58, %v779_v9 }
 0x1a3   : > { %v674_v53 = vpop.f32.mrb[7].mxu1  ;;  %v4868_v55 = vadd.f32 %v3840_v52, %v3647_v34 }
 0x1a4   : > { %v4866_v54 = vadd.f32 %v3647_v34, %v674_v53  ;;  %v4895_v11 = vpack.c.bf16 %v785_v8, %v780_v10  ;;  %v4897_v12 = vpack.i.bf16 %v785_v8, %v780_v10 }
 0x1a5   : > { %810 = vrot.lane.b32.xlu1 %v665_v42, %s4480_s11  ;;  %804 = vrot.lane.b32.xlu0 %v665_v42, %s4479_s21 }
 0x1a9   : > { %816 = vrot.lane.b32.xlu1 %v665_v42, %s4478_s22  ;;  %812 = vrot.lane.b32.xlu0 %v670_v38, %s4480_s11 }
 0x1ad   : > { %792 = vrot.lane.b32.xlu1 %v565_v43, %s4479_s21  ;;  %790 = vrot.lane.b32.xlu0 %v560_v26, %s4479_s21 }
 0x1b1   : > { %798 = vrot.lane.b32.xlu1 %v560_v26, %s4478_s22  ;;  %794 = vrot.lane.b32.xlu0 %v560_v26, %s4480_s11 }
 0x1b5   : > { %800 = vrot.lane.b32.xlu1 %v565_v43, %s4478_s22  ;;  %796 = vrot.lane.b32.xlu0 %v565_v43, %s4480_s11 }
 0x1d3   : > { %842 = vxpose.xlu0.b32.start [1/2] (short) (narrow) %v665_v42, 8 }
 0x1d7   : > { %843 = vxpose.xlu0.b32.end [2/2] (short) (narrow) %v670_v38, 8 }
 0x213   : > { %v819_v44 = vpop.permute.xlu1 %818  ;;  %v807_v45 = vpop.permute.xlu0 %806 }
 0x217   : > { %v811_v46 = vpop.permute.xlu1 %810  ;;  %v805_v47 = vpop.permute.xlu0 %804 }
 0x218   : > { %874 = vxpose.xlu1.b32.start [1/2] (short) (narrow) %v805_v47, 8  ;;  %906 = vxpose.xlu0.b32.start [1/2] (short) (narrow) %v811_v46, 8 }
 0x21b   : > { %v813_v48 = vpop.permute.xlu0 %812  ;;  %v817_v49 = vpop.permute.xlu1 %816 }
 0x21c   : > { %875 = vxpose.xlu1.b32.end [2/2] (short) (narrow) %v807_v45, 8  ;;  %907 = vxpose.xlu0.b32.end [2/2] (short) (narrow) %v813_v48, 8 }
 0x21f   : > { %v791_v50 = vpop.permute.xlu0 %790  ;;  %v793_v0 = vpop.permute.xlu1 %792 }
 0x220   : > { %938 = vxpose.xlu0.b32.start [1/2] (short) (narrow) %v817_v49, 8 }
 0x223   : > { %v795_v51 = vpop.permute.xlu0 %794  ;;  %v799_v1 = vpop.permute.xlu1 %798 }
 0x224   : > { %939 = vxpose.xlu0.b32.end [2/2] (short) (narrow) %v819_v44, 8  ;;  %3867 = vmatprep.mubr.msk.f32.mxu0 %vm970_vm1, %v795_v51 }
 0x227   : > { %v797_v56 = vpop.permute.xlu0 %796  ;;  %v801_v2 = vpop.permute.xlu1 %800 }
 0x23a   : > { %2061 = vrot.lane.b32.xlu1 %v4866_v54, %s4479_s21 }
 0x23e   : > { %2063 = vrot.lane.b32.xlu1 %v4868_v55, %s4479_s21 }
 0x242   : > { %2073 = vrot.lane.b32.xlu1 %v4866_v54, %s4478_s22 }
 0x246   : > { %2069 = vrot.lane.b32.xlu1 %v4868_v55, %s4480_s11 }
 0x24a   : > { %2075 = vrot.lane.b32.xlu1 %v4868_v55, %s4478_s22 }
 0x24d   : > { %2067 = vrot.lane.b32.xlu0 %v4866_v54, %s4480_s11 }
 0x24e   : > { %4124 = vrot.lane.b32.xlu1 %v4887_v63, %s4479_s21 }
 0x253   : > { %v858_v57 = vpop.trf.xlu0 }
 0x254   : > { %3855 = vmatprep.subr.mxu1 %v858_v57 }
 0x255   : > { %3856 = vmatpush3.msra.mxu1 %v858_v57 }
 0x256   : > { %3858 = vmatmul.mubr.msk.f32.vlgmr.msra.gmra.mrb[8].mxu1 %vm970_vm1, %v565_v43 }
 0x257   : > { %3862 = vmatprep.mubr.msk.f32.mxu1 %vm970_vm1, %v791_v50 }
 0x298   : > { %v890_v3 = vpop.trf.xlu1  ;;  %v922_v4 = vpop.trf.xlu0 }
 0x299   : > { %3860 = vmatprep.subr.mxu1 %v890_v3  ;;  %3865 = vmatprep.subr.mxu0 %v922_v4 }
 0x29a   : > { %3861 = vmatpush3.msra.mxu1 %v890_v3  ;;  %3866 = vmatpush3.msra.mxu0 %v922_v4 }
 0x29b   : > { %3863 = vmatmul.mubr.msk.f32.vlgmr.msra.gmra.mrb[10].mxu1 %vm970_vm1, %v793_v0  ;;  %3868 = vmatmul.mubr.msk.f32.vlgmr.msra.gmra.mrb[4].mxu0 %vm970_vm1, %v797_v56 }
 0x29c   : > { %3872 = vmatprep.mubr.msk.f32.mxu1 %vm970_vm1, %v799_v1  ;;  %3990 = vmatprep.subr.bf16.mxu0 %v3989_v6 }
 0x29d   : > { %3992 = vmatpush3.bf16.msra.mxu0 %v3989_v6 }
 0x2a0   : > { %v954_v5 = vpop.trf.xlu0 }
 0x2a1   : > { %3870 = vmatprep.subr.mxu1 %v954_v5 }
 0x2a2   : > { %3871 = vmatpush3.msra.mxu1 %v954_v5 }
 0x2a3   : > { %3873 = vmatmul.mubr.msk.f32.vlgmr.msra.gmra.mrb[12].mxu1 %vm970_vm1, %v801_v2 }
 0x2ac   : > { %v4899_v13 = vpop.permute.xlu1 %2061 }
 0x2b0   : > { %v4901_v14 = vpop.permute.xlu1 %2063 }
 0x2b4   : > { %v4903_v15 = vpop.permute.xlu1 %2073 }
 0x2b8   : > { %v4905_v16 = vpop.permute.xlu1 %2069 }
 0x2bc   : > { %v4907_v17 = vpop.permute.xlu1 %2075 }
 0x2bf   : > { %v4942_v50 = vpop.permute.xlu0 %2067 }
 0x2c0   : > { %v4125_v18 = vpop.permute.xlu1 %4124 }
 0x2c1   : > { %v4127_v19 = vunpack.i.h.bf16 %v4125_v18  ;;  %v4126_v20 = vunpack.i.l.bf16 %v4125_v18 }
 0x2c3   : > { %v3993_v21 = vpack.c.bf16 %v4127_v19, %v4126_v20 }
 0x2c5   : > { %3994 = vmatprep.subr.bf16.mxu1 %v3993_v21 }
 0x2c6   : > { %3996 = vmatpush3.bf16.msra.mxu1 %v3993_v21 }
 0x329   : > { %v3859_v22 = vpop.f32.mrb[8].mxu1 }
 0x32a   : > { %v1041_v23 = vpop.f32.mrb[9].mxu1  ;;  %v1291_v24 = vsel %vm1287_vm2, %v3859_v22, -inf }
 0x32b   : > { %1292 = vmax.xlane.f32.xlu1 %v1291_v24  ;;  %v1288_v25 = vsel %vm1287_vm2, %v1041_v23, -inf }
 0x32f   : > { %1289 = vmax.xlane.f32.xlu1 %v1288_v25 }
 0x36e   : > { %v3864_v26 = vpop.f32.mrb[10].mxu1  ;;  %v3869_v27 = vpop.f32.mrb[4].mxu0 }
 0x36f   : > { %v1120_v28 = vpop.f32.mrb[11].mxu1  ;;  %v1199_v29 = vpop.f32.mrb[5].mxu0  ;;  %v1297_v30 = vsel %vm1287_vm2, %v3864_v26, -inf  ;;  %v1303_v34 = vsel %vm1287_vm2, %v3869_v27, -inf }
 0x370   : > { %1298 = vmax.xlane.f32.xlu1 %v1297_v30  ;;  %v1294_v32 = vsel %vm1287_vm2, %v1120_v28, -inf  ;;  %v1300_v37 = vsel %vm1287_vm2, %v1199_v29, -inf }
 0x371   : > { %1295 = vmax.xlane.f32.xlu0 %v1294_v32 }
 0x374   : > { %1304 = vmax.xlane.f32.xlu1 %v1303_v34 }
 0x376   : > { %v3874_v35 = vpop.f32.mrb[12].mxu1 }
 0x377   : > { %v4914_v36 = vpop.f32.mrb[13].mxu1  ;;  %v1309_v38 = vsel %vm1287_vm2, %v3874_v35, -inf }
 0x378   : > { %1301 = vmax.xlane.f32.xlu1 %v1300_v37  ;;  %1310 = vmax.xlane.f32.xlu0 %v1309_v38  ;;  %v1306_v39 = vsel %vm1287_vm2, %v4914_v36, -inf }
 0x37c   : > { %1307 = vmax.xlane.f32.xlu0 %v1306_v39 }
 0x389   : > { %4129 = vrot.lane.b32.xlu1 %v4887_v63, %s4480_s11 }
 0x38d   : > { %2047 = vrot.lane.b32.xlu1 %v4840_v33, %s4479_s21 }
 0x391   : > { %2051 = vrot.lane.b32.xlu1 %v4840_v33, %s4480_s11 }
 0x392   : > { %4134 = vrot.lane.b32.xlu0 %v4887_v63, %s4478_s22 }
 0x396   : > { %2049 = vrot.lane.b32.xlu0 %v4838_v31, %s4479_s21 }
 0x39a   : > { %2055 = vrot.lane.b32.xlu0 %v4840_v33, %s4478_s22 }
 0x3b8   : > { %v1293_v40 = vpop.xlane.xlu1 %1292 }
 0x3b9   : > { %v1313_v41 = vsub.f32 %v3859_v22, %v1293_v40 }
 0x3bb   : > { %v1322_v42 = vmul.f32 1.442695, %v1313_v41 }
 0x3bc   : > { %v1290_v43 = vpop.xlane.xlu1 %1289 }
 0x3bd   : > { %4153 = vpow2.f32 %v1322_v42  ;;  %v1312_v44 = vsub.f32 %v1041_v23, %v1290_v43 }
 0x3bf   : > { %v1320_v45 = vmul.f32 1.442695, %v1312_v44 }
 0x3c1   : > { %4155 = vpow2.f32 %v1320_v45 }
 0x3c7   : > { %v4932_v46 = vpop.eup %4153 }
 0x3c8   : > { %v1339_v47 = vsel %vm1287_vm2, %v4932_v46, 0.0 }
 0x3c9   : > { %1340 = vadd.xlane.f32.xlu1 %v1339_v47 }
 0x3cb   : > { %v4936_v48 = vpop.eup %4155 }
 0x3cc   : > { %v1336_v49 = vsel %vm1287_vm2, %v4936_v48, 0.0 }
 0x3cd   : > { %1337 = vadd.xlane.f32.xlu1 %v1336_v49 }
 0x3de   : > { %2053 = vrot.lane.b32.xlu1 %v4838_v31, %s4480_s11 }
 0x3fd   : > { %v1299_v51 = vpop.xlane.xlu1 %1298 }
 0x3fe   : > { %v1315_v52 = vsub.f32 %v3864_v26, %v1299_v51  ;;  %v1296_v53 = vpop.xlane.xlu0 %1295 }
 0x3ff   : > { %v1314_v57 = vsub.f32 %v1120_v28, %v1296_v53 }
 0x400   : > { %v1326_v56 = vmul.f32 1.442695, %v1315_v52 }
 0x401   : > { %v1305_v58 = vpop.xlane.xlu1 %1304  ;;  %v1324_v60 = vmul.f32 1.442695, %v1314_v57 }
 0x402   : > { %4157 = vpow2.f32 %v1326_v56  ;;  %v1317_v59 = vsub.f32 %v3869_v27, %v1305_v58 }
 0x404   : > { %v1330_v61 = vmul.f32 1.442695, %v1317_v59 }
 0x405   : > { %v1302_v62 = vpop.xlane.xlu1 %1301  ;;  %v1311_v63 = vpop.xlane.xlu0 %1310 }
 0x406   : > { %4159 = vpow2.f32 %v1330_v61  ;;  %v1316_v0 = vsub.f32 %v1199_v29, %v1302_v62  ;;  %v1319_v2 = vsub.f32 %v3874_v35, %v1311_v63 }
 0x407   : > { %2099 = vxpose.xlu1.b32.start [1/2] (short) (narrow) %v4866_v54, 8  ;;  %4161 = vpow2.f32 %v1324_v60 }
 0x408   : > { %v1328_v1 = vmul.f32 1.442695, %v1316_v0  ;;  %v1334_v8 = vmul.f32 1.442695, %v1319_v2 }
 0x409   : > { %v4130_v3 = vpop.permute.xlu1 %4129  ;;  %v1308_v4 = vpop.xlane.xlu0 %1307 }
 0x40a   : > { %v4132_v5 = vunpack.i.h.bf16 %v4130_v3  ;;  %v4131_v6 = vunpack.i.l.bf16 %v4130_v3  ;;  %4163 = vpow2.f32 %v1328_v1  ;;  %v1318_v10 = vsub.f32 %v4914_v36, %v1308_v4 }
 0x40b   : > { %2100 = vxpose.xlu1.b32.end [2/2] (short) (narrow) %v4868_v55, 8  ;;  %4165 = vpow2.f32 %v1334_v8 }
 0x40c   : > { %v4946_v7 = vpop.eup %4157  ;;  %v3997_v9 = vpack.c.bf16 %v4132_v5, %v4131_v6  ;;  %v1332_v55 = vmul.f32 1.442695, %v1318_v10 }
 0x40d   : > { %v4135_v18 = vpop.permute.xlu0 %4134  ;;  %v1345_v54 = vsel %vm1287_vm2, %v4946_v7, 0.0  ;;  %v4978_v30 = vpop.permute.xlu1 %2047 }
 0x40e   : > { %v4137_v19 = vunpack.i.h.bf16 %v4135_v18  ;;  %v4136_v20 = vunpack.i.l.bf16 %v4135_v18  ;;  %3998 = vmatprep.subr.bf16.mxu0 %v3997_v9  ;;  %1346 = vadd.xlane.f32.xlu0 %v1345_v54  ;;  %4167 = vpow2.f32 %v1332_v55 }
 0x40f   : > { %2195 = vxpose.xlu1.b32.start [1/2] (short) (narrow) %v4903_v15, 8 }
 0x410   : > { %v4952_v21 = vpop.eup %4159  ;;  %v4954_v22 = vpack.c.bf16 %v4137_v19, %v4136_v20 }
 0x411   : > { %v1351_v23 = vsel %vm1287_vm2, %v4952_v21, 0.0  ;;  %v4958_v24 = vpop.eup %4161  ;;  %v4980_v32 = vpop.permute.xlu1 %2051 }
 0x412   : > { %1352 = vadd.xlane.f32.xlu0 %v1351_v23  ;;  %4002 = vmatprep.subr.bf16.mxu1 %v4954_v22  ;;  %v1342_v15 = vsel %vm1287_vm2, %v4958_v24, 0.0  ;;  %v4995_v45 = vpop.permute.xlu0 %2049 }
 0x413   : > { %2196 = vxpose.xlu1.b32.end [2/2] (short) (narrow) %v4907_v17, 8 }
 0x414   : > { %v4964_v25 = vpop.eup %4163 }
 0x415   : > { %v1348_v26 = vsel %vm1287_vm2, %v4964_v25, 0.0  ;;  %v4968_v27 = vpop.eup %4165 }
 0x416   : > { %1343 = vadd.xlane.f32.xlu0 %v1342_v15  ;;  %v1357_v28 = vsel %vm1287_vm2, %v4968_v27, 0.0  ;;  %v4997_v47 = vpop.permute.xlu0 %2055 }
 0x418   : > { %v4972_v29 = vpop.eup %4167 }
 0x419   : > { %v1354_v17 = vsel %vm1287_vm2, %v4972_v29, 0.0 }
 0x41a   : > { %1349 = vadd.xlane.f32.xlu0 %v1348_v26 }
 0x41e   : > { %1358 = vadd.xlane.f32.xlu0 %v1357_v28 }
 0x422   : > { %1355 = vadd.xlane.f32.xlu0 %v1354_v17 }
 0x438   : > { %2057 = vrot.lane.b32.xlu0 %v4838_v31, %s4478_s22 }
 0x456   : > { %v1341_v34 = vpop.xlane.xlu1 %1340  ;;  %2131 = vxpose.xlu0.b32.start [1/2] (short) (narrow) %v4899_v13, 8 }
 0x457   : > { %4169 = vrcp.f32 %v1341_v34 }
 0x45a   : > { %v1338_v35 = vpop.xlane.xlu1 %1337  ;;  %2132 = vxpose.xlu0.b32.end [2/2] (short) (narrow) %v4901_v14, 8 }
 0x45b   : > { %4171 = vrcp.f32 %v1338_v35 }
 0x45e   : > { %2163 = vxpose.xlu0.b32.start [1/2] (short) (narrow) %v4942_v50, 8  ;;  %v4993_v14 = vpop.permute.xlu1 %2053 }
 0x461   : > { %v4170_v36 = vpop.eup %4169 }
 0x462   : > { %v1369_v37 = vmul.f32 %v4170_v36, %v1341_v34  ;;  %2164 = vxpose.xlu0.b32.end [2/2] (short) (narrow) %v4905_v16, 8 }
 0x464   : > { %v1377_v39 = vsub.f32 2.0, %v1369_v37 }
 0x465   : > { %v4172_v38 = vpop.eup %4171 }
 0x466   : > { %v1368_v40 = vmul.f32 %v4172_v38, %v1338_v35  ;;  %v1385_v42 = vmul.f32 %v4170_v36, %v1377_v39 }
 0x468   : > { %v1376_v41 = vsub.f32 2.0, %v1368_v40  ;;  %v1393_v13 = vmul.f32 %v4932_v46, %v1385_v42 }
 0x46a   : > { %v1384_v43 = vmul.f32 %v4172_v38, %v1376_v41  ;;  %v2034_v23 = vsel %vm1287_vm2, %v1393_v13, 0.0 }
 0x46c   : > { %v4987_v44 = vmul.f32 %v4936_v48, %v1384_v43 }
 0x46e   : > { %3879 = vmatprep.mubr.msk.f32.mxu0 %vm1287_vm2, %v4987_v44  ;;  %v2027_v34 = vsel %vm1287_vm2, %v4987_v44, 0.0 }
 0x46f   : > { %3880 = vmatmul.mubr.msk.f32.vlgmr.msra.gmra.mrb[6].mxu0 %vm1287_vm2, %v1393_v13 }
 0x470   : > { %4000 = vmatpush3.bf16.msra.mxu0 %v3997_v9 }
 0x487   : > { %v2115_v16 = vpop.trf.xlu1 }
 0x488   : > { %3903 = vmatprep.subr.mxu0 %v2115_v16 }
 0x48f   : > { %v2211_v43 = vpop.trf.xlu1 }
 0x49b   : > { %v1347_v49 = vpop.xlane.xlu0 %1346 }
 0x49c   : > { %4173 = vrcp.f32 %v1347_v49 }
 0x49f   : > { %v1353_v48 = vpop.xlane.xlu0 %1352 }
 0x4a0   : > { %4175 = vrcp.f32 %v1353_v48 }
 0x4a3   : > { %v1344_v50 = vpop.xlane.xlu0 %1343 }
 0x4a4   : > { %4177 = vrcp.f32 %v1344_v50 }
 0x4a6   : > { %v4174_v46 = vpop.eup %4173 }
 0x4a7   : > { %v1350_v51 = vpop.xlane.xlu0 %1349  ;;  %v1371_v52 = vmul.f32 %v4174_v46, %v1347_v49  ;;  %v4481_v49 = vmov 1983009808  }
 0x4a8   : > { %4179 = vrcp.f32 %v1350_v51 }
 0x4a9   : > { %v1379_v58 = vsub.f32 2.0, %v1371_v52 }
 0x4aa   : > { %v4176_v53 = vpop.eup %4175 }
 0x4ab   : > { %v1373_v56 = vmul.f32 %v4176_v53, %v1353_v48  ;;  %v1359_v57 = vpop.xlane.xlu0 %1358  ;;  %v1387_v63 = vmul.f32 %v4174_v46, %v1379_v58  ;;  %v1727_v48 = vunpack.c.l.s4 %v4481_v49 }
 0x4ac   : > { %4181 = vrcp.f32 %v1359_v57 }
 0x4ad   : > { %v1381_v60 = vsub.f32 2.0, %v1373_v56  ;;  %v1395_v5 = vmul.f32 %v4946_v7, %v1387_v63 }
 0x4ae   : > { %v4178_v59 = vpop.eup %4177 }
 0x4af   : > { %v1370_v61 = vmul.f32 %v4178_v59, %v1344_v50  ;;  %v1356_v62 = vpop.xlane.xlu0 %1355  ;;  %v1389_v2 = vmul.f32 %v4176_v53, %v1381_v60  ;;  %v2035_v19 = vsel %vm1287_vm2, %v1395_v5, 0.0 }
 0x4b0   : > { %4183 = vrcp.f32 %v1356_v62  ;;  %v2036_v26 = vadd.f32 %v2035_v19, %v2034_v23 }
 0x4b1   : > { %v1378_v0 = vsub.f32 2.0, %v1370_v61  ;;  %v1397_v10 = vmul.f32 %v4952_v21, %v1389_v2 }
 0x4b2   : > { %v4180_v1 = vpop.eup %4179 }
 0x4b3   : > { %v1386_v3 = vmul.f32 %v4178_v59, %v1378_v0  ;;  %v1372_v4 = vmul.f32 %v4180_v1, %v1350_v51 }
 0x4b5   : > { %v1394_v6 = vmul.f32 %v4958_v24, %v1386_v3  ;;  %v1380_v8 = vsub.f32 2.0, %v1372_v4  ;;  %v2037_v24 = vsel %vm1287_vm2, %v1397_v10, 0.0 }
 0x4b6   : > { %v4182_v9 = vpop.eup %4181 }
 0x4b7   : > { %v1388_v18 = vmul.f32 %v4180_v1, %v1380_v8  ;;  %v1375_v54 = vmul.f32 %v4182_v9, %v1359_v57  ;;  %3886 = vmatprep.mubr.msk.f32.mxu1 %vm1287_vm2, %v1394_v6  ;;  %v2028_v28 = vsel %vm1287_vm2, %v1394_v6, 0.0  ;;  %v4482_v57 = vmov 1934713408  }
 0x4b8   : > { %3887 = vmatmul.mubr.msk.f32.vlgmr.msra.gmra.mrb[14].mxu1 %vm1287_vm2, %v1395_v5  ;;  %v2029_v38 = vadd.f32 %v2028_v28, %v2027_v34  ;;  %v1759_v58 = vunpack.c.l.s4 %v4482_v57 }
 0x4b9   : > { %v1396_v20 = vmul.f32 %v4964_v25, %v1388_v18  ;;  %v1383_v55 = vsub.f32 2.0, %v1375_v54  ;;  %4004 = vmatpush3.bf16.msra.mxu1 %v4954_v22  ;;  %v2038_v22 = vadd.f32 %v2037_v24, %v2036_v26 }
 0x4ba   : > { %v4184_v7 = vpop.eup %4183 }
 0x4bb   : > { %v1391_v15 = vmul.f32 %v4182_v9, %v1383_v55  ;;  %v1374_v21 = vmul.f32 %v4184_v7, %v1356_v62  ;;  %3893 = vmatprep.mubr.msk.f32.mxu0 %vm1287_vm2, %v1396_v20  ;;  %v2030_v35 = vsel %vm1287_vm2, %v1396_v20, 0.0  ;;  %v1760_v62 = vunpack.c.0.s8 %v1759_v58 }
 0x4bc   : > { %3894 = vmatmul.mubr.msk.f32.vlgmr.msra.gmra.mrb[8].mxu0 %vm1287_vm2, %v1397_v10 }
 0x4bd   : > { %v1399_v17 = vmul.f32 %v4968_v27, %v1391_v15  ;;  %v1382_v25 = vsub.f32 2.0, %v1374_v21  ;;  %3905 = vmatprep.mubr.msk.f32.mxu0 %vm970_vm1, %v4840_v33  ;;  %3904 = vmatpush3.msra.mxu0 %v2115_v16  ;;  %v2031_v33 = vadd.f32 %v2030_v35, %v2029_v38 }
 0x4bf   : > { %v2039_v36 = vsel %vm1287_vm2, %v1399_v17, 0.0  ;;  %v1390_v37 = vmul.f32 %v4184_v7, %v1382_v25 }
 0x4c0   : > { %v2040_v39 = vadd.f32 %v2039_v36, %v2038_v22  ;;  %3906 = vmatmul.mubr.msk.f32.vlgmr.msra.gmra.mrb[10].mxu0 %vm970_vm1, %v4838_v31 }
 0x4c1   : > { %v1398_v27 = vmul.f32 %v4972_v29, %v1390_v37  ;;  %3915 = vmatprep.mubr.msk.f32.mxu0 %vm970_vm1, %v4980_v32  ;;  %v2058_v29 = vpop.permute.xlu0 %2057 }
 0x4c2   : > { %v2042_v40 = vmul.f32 0.25, %v2040_v39 }
 0x4c3   : > { %v2032_v41 = vsel %vm1287_vm2, %v1398_v27, 0.0  ;;  %3900 = vmatprep.mubr.msk.f32.mxu1 %vm1287_vm2, %v1398_v27 }
 0x4c4   : > { %2044 = vst.msk [vmem:[%s5027_s24 + $0x8] sm:$0xff] %vm1287_vm2, %v2042_v40  ;;  %v2033_v42 = vadd.f32 %v2032_v41, %v2031_v33  ;;  %3901 = vmatmul.mubr.msk.f32.vlgmr.msra.gmra.mrb[16].mxu1 %vm1287_vm2, %v1399_v17 }
 0x4c5   : > { %3910 = vmatprep.mubr.msk.f32.mxu1 %vm970_vm1, %v4978_v30 }
 0x4c6   : > { %v2041_v31 = vmul.f32 0.25, %v2033_v42 }
 0x4c8   : > { %2043 = vst.msk [vmem:[%s5027_s24] sm:$0xff] %vm1287_vm2, %v2041_v31 }
 0x4d6   : > { %v2147_v32 = vpop.trf.xlu0 }
 0x4d7   : > { %3908 = vmatprep.subr.mxu1 %v2147_v32 }
 0x4d8   : > { %3909 = vmatpush3.msra.mxu1 %v2147_v32 }
 0x4d9   : > { %3911 = vmatmul.mubr.msk.f32.vlgmr.msra.gmra.mrb[18].mxu1 %vm970_vm1, %v4995_v45  ;;  %3918 = vmatprep.subr.mxu1 %v2211_v43 }
 0x4da   : > { %3920 = vmatprep.mubr.msk.f32.mxu1 %vm970_vm1, %v4997_v47  ;;  %3919 = vmatpush3.msra.mxu1 %v2211_v43  ;;  %v1729_v47 = vlaneseq }
 0x4dc   : > { %v1730_v59 = vshrl.u32 %v1729_v47, 7 }
 0x4dd   : > { %3921 = vmatmul.mubr.msk.f32.vlgmr.msra.gmra.mrb[20].mxu1 %vm970_vm1, %v2058_v29 }
 0x4de   : > { %v2179_v44 = vpop.trf.xlu0  ;;  %v5055_v5 = vsub.s32 %v1760_v62, %v1730_v59 }
 0x4df   : > { %3913 = vmatprep.subr.mxu0 %v2179_v44 }
 0x4e0   : > { %3914 = vmatpush3.msra.mxu0 %v2179_v44 }
 0x4e1   : > { %3916 = vmatmul.mubr.msk.f32.vlgmr.msra.gmra.mrb[12].mxu0 %vm970_vm1, %v4993_v14  ;;  %4006 = vmatprep.subr.bf16.mxu0 %v4895_v11  ;;  %v1728_v14 = vunpack.c.0.s8 %v1727_v48 }
 0x4e2   : > { %4008 = vmatpush3.bf16.msra.mxu0 %v4895_v11 }
 0x4e3   : > { %v5051_v63 = vsub.s32 %v1728_v14, %v1730_v59 }
 0x542   : > { %v3881_v30 = vpop.f32.mrb[6].mxu0 }
 0x543   : > { %v1472_v13 = vpop.f32.mrb[7].mxu0 }
 0x58b   : > { %v3888_v16 = vpop.f32.mrb[14].mxu1 }
 0x58c   : > { %v1553_v45 = vpop.f32.mrb[15].mxu1 }
 0x58f   : > { %v3895_v50 = vpop.f32.mrb[8].mxu0 }
 0x590   : > { %v1792_v46 = vcombine.low %v3881_v30, %v3895_v50  ;;  %v1793_v51 = vcombine.high %v3881_v30, %v3895_v50  ;;  %v1634_v52 = vpop.f32.mrb[9].mxu0 }
 0x591   : > { %v1724_v53 = vcombine.low %v1472_v13, %v1634_v52  ;;  %v1725_v56 = vcombine.high %v1472_v13, %v1634_v52 }
 0x592   : > { %v1800_v9 = vrot.slane %v1792_v46, %v5051_v63  ;;  %v1807_v10 = vrot.slane %v1793_v51, %v5051_v63 }
 0x593   : > { %v5045_v60 = vpop.f32.mrb[10].mxu0  ;;  %v1732_v19 = vrot.slane %v1724_v53, %v5051_v63  ;;  %v1739_v20 = vrot.slane %v1725_v56, %v5051_v63 }
 0x594   : > { %v5047_v11 = vpop.f32.mrb[11].mxu0  ;;  %v2546_v61 = vsel %vm1287_vm2, %v5045_v60, -inf }
 0x595   : > { %2547 = vmax.xlane.f32.xlu0 %v2546_v61  ;;  %v2543_v4 = vsel %vm1287_vm2, %v5047_v11, -inf }
 0x597   : > { %v3902_v0 = vpop.f32.mrb[16].mxu1 }
 0x598   : > { %v1808_v1 = vcombine.low %v3888_v16, %v3902_v0  ;;  %v1809_v2 = vcombine.high %v3888_v16, %v3902_v0  ;;  %v1715_v3 = vpop.f32.mrb[17].mxu1 }
 0x599   : > { %v1740_v6 = vcombine.low %v1553_v45, %v1715_v3  ;;  %v1741_v8 = vcombine.high %v1553_v45, %v1715_v3  ;;  %2544 = vmax.xlane.f32.xlu0 %v2543_v4 }
 0x59a   : > { %v1816_v18 = vrot.slane %v1808_v1, %v5051_v63  ;;  %v1823_v54 = vrot.slane %v1809_v2, %v5051_v63 }
 0x59b   : > { %v1748_v55 = vrot.slane %v1740_v6, %v5051_v63  ;;  %v1755_v7 = vrot.slane %v1741_v8, %v5051_v63 }
 0x59c   : > { %v1824_v23 = vcombine.low %v1800_v9, %v1816_v18  ;;  %v1825_v24 = vcombine.high %v1800_v9, %v1816_v18  ;;  %v1840_v15 = vcombine.low %v1807_v10, %v1823_v54  ;;  %v1841_v21 = vcombine.high %v1807_v10, %v1823_v54 }
 0x59d   : > { %v1756_v26 = vcombine.low %v1732_v19, %v1748_v55  ;;  %v1757_v28 = vcombine.high %v1732_v19, %v1748_v55  ;;  %v1772_v17 = vcombine.low %v1739_v20, %v1755_v7  ;;  %v1773_v25 = vcombine.high %v1739_v20, %v1755_v7 }
 0x59e   : > { %v1832_v22 = vrot.slane %v1824_v23, %v5055_v5  ;;  %v1839_v34 = vrot.slane %v1825_v24, %v5055_v5  ;;  %v1848_v35 = vrot.slane %v1840_v15, %v5055_v5  ;;  %v1855_v36 = vrot.slane %v1841_v21, %v5055_v5 }
 0x59f   : > { %v1764_v37 = vrot.slane %v1756_v26, %v5055_v5  ;;  %v1771_v38 = vrot.slane %v1757_v28, %v5055_v5  ;;  %v1780_v39 = vrot.slane %v1772_v17, %v5055_v5  ;;  %v1787_v27 = vrot.slane %v1773_v25, %v5055_v5 }
 0x5a0   : > { %v1928_v33 = vcombine.low %v1832_v22, %v1839_v34  ;;  %v3676_v40 = vcombine.high %v1832_v22, %v1839_v34  ;;  %v1944_v41 = vcombine.low %v1848_v35, %v1855_v36  ;;  %v3677_v42 = vcombine.high %v1848_v35, %v1855_v36 }
 0x5a1   : > { %v1860_v31 = vcombine.low %v1764_v37, %v1771_v38  ;;  %v3674_v29 = vcombine.high %v1764_v37, %v1771_v38  ;;  %v1876_v32 = vcombine.low %v1780_v39, %v1787_v27  ;;  %v3675_v43 = vcombine.high %v1780_v39, %v1787_v27 }
 0x5a2   : > { %v1935_v44 = vrot.slane %v1928_v33, %v5051_v63  ;;  %v1943_v30 = vrot.slane %v3676_v40, %v5051_v63  ;;  %v1951_v13 = vrot.slane %v1944_v41, %v5051_v63  ;;  %v1959_v16 = vrot.slane %v3677_v42, %v5051_v63 }
 0x5a3   : > { %v1867_v45 = vrot.slane %v1860_v31, %v5051_v63  ;;  %v1875_v49 = vrot.slane %v3674_v29, %v5051_v63  ;;  %v1883_v48 = vrot.slane %v1876_v32, %v5051_v63  ;;  %v1891_v47 = vrot.slane %v3675_v43, %v5051_v63 }
 0x5a4   : > { %v1960_v50 = vcombine.low %v1935_v44, %v1943_v30  ;;  %v1976_v46 = vcombine.low %v1951_v13, %v1959_v16  ;;  %v1961_v51 = vcombine.high %v1935_v44, %v1943_v30  ;;  %v1977_v52 = vcombine.high %v1951_v13, %v1959_v16 }
 0x5a5   : > { %v1892_v53 = vcombine.low %v1867_v45, %v1875_v49  ;;  %v1908_v56 = vcombine.low %v1883_v48, %v1891_v47  ;;  %v1893_v57 = vcombine.high %v1867_v45, %v1875_v49  ;;  %v1909_v58 = vcombine.high %v1883_v48, %v1891_v47 }
 0x5a6   : > { %v5082_v14 = vrot.slane %v1960_v50, %v5055_v5  ;;  %v5085_v59 = vrot.slane %v1976_v46, %v5055_v5  ;;  %v5088_v61 = vrot.slane %v1961_v51, %v5055_v5  ;;  %v5091_v62 = vrot.slane %v1977_v52, %v5055_v5 }
 0x5a7   : > { %v5094_v0 = vrot.slane %v1892_v53, %v5055_v5  ;;  %v5097_v1 = vrot.slane %v1908_v56, %v5055_v5  ;;  %v5100_v2 = vrot.slane %v1893_v57, %v5055_v5  ;;  %v5103_v3 = vrot.slane %v1909_v58, %v5055_v5 }
 0x5a8   : > { %v1993_v4 = vcombine.high %v5082_v14, %v5085_v59  ;;  %v1994_v6 = vcombine.low %v5088_v61, %v5091_v62  ;;  %v1995_v8 = vcombine.high %v5088_v61, %v5091_v62  ;;  %v1992_v9 = vcombine.low %v5082_v14, %v5085_v59 }
 0x5a9   : > { %v1925_v10 = vcombine.high %v5094_v0, %v5097_v1  ;;  %v1926_v18 = vcombine.low %v5100_v2, %v5103_v3  ;;  %v1927_v54 = vcombine.high %v5100_v2, %v5103_v3  ;;  %v1924_v19 = vcombine.low %v5094_v0, %v5097_v1 }
 0x5ac   : > { %v3912_v20 = vpop.f32.mrb[18].mxu1 }
 0x5ad   : > { %v2376_v55 = vpop.f32.mrb[19].mxu1  ;;  %v2552_v7 = vsel %vm1287_vm2, %v3912_v20, -inf }
 0x5ae   : > { %2553 = vmax.xlane.f32.xlu1 %v2552_v7  ;;  %v2549_v15 = vsel %vm1287_vm2, %v2376_v55, -inf }
 0x5b0   : > { %v3922_v23 = vpop.f32.mrb[20].mxu1 }
 0x5b1   : > { %v2534_v24 = vpop.f32.mrb[21].mxu1  ;;  %v2564_v25 = vsel %vm1287_vm2, %v3922_v23, -inf }
 0x5b2   : > { %2550 = vmax.xlane.f32.xlu1 %v2549_v15  ;;  %v2561_v28 = vsel %vm1287_vm2, %v2534_v24, -inf }
 0x5b4   : > { %v3917_v21 = vpop.f32.mrb[12].mxu0 }
 0x5b5   : > { %v2455_v26 = vpop.f32.mrb[13].mxu0  ;;  %v2558_v22 = vsel %vm1287_vm2, %v3917_v21, -inf }
 0x5b6   : > { %2562 = vmax.xlane.f32.xlu1 %v2561_v28  ;;  %v2555_v17 = vsel %vm1287_vm2, %v2455_v26, -inf }
 0x5b7   : > { %2556 = vmax.xlane.f32.xlu0 %v2555_v17 }
 0x5ba   : > { %2565 = vmax.xlane.f32.xlu1 %v2564_v25 }
 0x5bb   : > { %2559 = vmax.xlane.f32.xlu0 %v2558_v22  ;;  %v3300_v22 = vld [vmem:[#allocation10] sm:$0xff] }
 0x622   : > { %v2548_v34 = vpop.xlane.xlu0 %2547 }
 0x623   : > { %v2568_v35 = vsub.f32 %v5045_v60, %v2548_v34  ;;  %v3301_v34 = vld [vmem:[#allocation10 + $0x8] sm:$0xff] }
 0x625   : > { %v2577_v36 = vmul.f32 1.442695, %v2568_v35 }
 0x626   : > { %v2545_v37 = vpop.xlane.xlu0 %2544 }
 0x627   : > { %4185 = vpow2.f32 %v2577_v36  ;;  %v2567_v38 = vsub.f32 %v5047_v11, %v2545_v37 }
 0x629   : > { %v2575_v39 = vmul.f32 1.442695, %v2567_v38  ;;  %v4021_v38 = vpack.c.bf16 %v3301_v34, %v3300_v22 }
 0x62b   : > { %4187 = vpow2.f32 %v2575_v39 }
 0x631   : > { %v5129_v27 = vpop.eup %4185 }
 0x632   : > { %v2594_v33 = vsel %vm1287_vm2, %v5129_v27, 0.0 }
 0x633   : > { %2595 = vadd.xlane.f32.xlu0 %v2594_v33 }
 0x635   : > { %v5133_v40 = vpop.eup %4187 }
 0x636   : > { %v2591_v41 = vsel %vm1287_vm2, %v5133_v40, 0.0 }
 0x637   : > { %2592 = vadd.xlane.f32.xlu0 %v2591_v41 }
 0x63b   : > { %v2554_v60 = vpop.xlane.xlu1 %2553 }
 0x63c   : > { %v2570_v42 = vsub.f32 %v3912_v20, %v2554_v60 }
 0x63e   : > { %v2581_v31 = vmul.f32 1.442695, %v2570_v42 }
 0x63f   : > { %v2551_v29 = vpop.xlane.xlu1 %2550 }
 0x640   : > { %4189 = vpow2.f32 %v2581_v31  ;;  %v2569_v11 = vsub.f32 %v2376_v55, %v2551_v29 }
 0x642   : > { %v2579_v32 = vmul.f32 1.442695, %v2569_v11 }
 0x643   : > { %v2563_v56 = vpop.xlane.xlu1 %2562 }
 0x644   : > { %4191 = vpow2.f32 %v2579_v32  ;;  %v2557_v43 = vpop.xlane.xlu0 %2556  ;;  %v2573_v20 = vsub.f32 %v2534_v24, %v2563_v56 }
 0x645   : > { %v2571_v44 = vsub.f32 %v2455_v26, %v2557_v43 }
 0x646   : > { %v2587_v7 = vmul.f32 1.442695, %v2573_v20 }
 0x647   : > { %v2583_v45 = vmul.f32 1.442695, %v2571_v44  ;;  %v2566_v57 = vpop.xlane.xlu1 %2565 }
 0x648   : > { %v2560_v30 = vpop.xlane.xlu0 %2559  ;;  %v2574_v58 = vsub.f32 %v3922_v23, %v2566_v57 }
 0x649   : > { %v2572_v13 = vsub.f32 %v3917_v21, %v2560_v30 }
 0x64a   : > { %v5137_v16 = vpop.eup %4189  ;;  %v2589_v55 = vmul.f32 1.442695, %v2574_v58 }
 0x64b   : > { %v2585_v49 = vmul.f32 1.442695, %v2572_v13  ;;  %v2600_v48 = vsel %vm1287_vm2, %v5137_v16, 0.0 }
 0x64c   : > { %2601 = vadd.xlane.f32.xlu1 %v2600_v48 }
 0x64d   : > { %4193 = vpow2.f32 %v2585_v49 }
 0x64e   : > { %v5141_v47 = vpop.eup %4191  ;;  %4195 = vpow2.f32 %v2583_v45 }
 0x64f   : > { %v2597_v50 = vsel %vm1287_vm2, %v5141_v47, 0.0  ;;  %4197 = vpow2.f32 %v2589_v55  ;;  %v3302_v55 = vld [vmem:[#allocation10 + $0x10] sm:$0xff] }
 0x650   : > { %2598 = vadd.xlane.f32.xlu1 %v2597_v50  ;;  %4199 = vpow2.f32 %v2587_v7  ;;  %v3303_v7 = vld [vmem:[#allocation10 + $0x18] sm:$0xff] }
 0x657   : > { %v5145_v46 = vpop.eup %4193 }
 0x658   : > { %v2606_v51 = vsel %vm1287_vm2, %v5145_v46, 0.0  ;;  %v5149_v52 = vpop.eup %4195 }
 0x659   : > { %2607 = vadd.xlane.f32.xlu0 %v2606_v51  ;;  %v2603_v53 = vsel %vm1287_vm2, %v5149_v52, 0.0  ;;  %v5169_v23 = vpop.eup %4197 }
 0x65a   : > { %v2612_v24 = vsel %vm1287_vm2, %v5169_v23, 0.0  ;;  %v5173_v15 = vpop.eup %4199 }
 0x65d   : > { %2604 = vadd.xlane.f32.xlu0 %v2603_v53 }
 0x661   : > { %4144 = vrot.lane.b32.xlu1 %v4897_v12, %s4480_s11 }
 0x673   : > { %4139 = vrot.lane.b32.xlu0 %v4897_v12, %s4479_s21 }
 0x677   : > { %1998 = vrot.lane.b32.xlu0 %v1925_v10, %s4483_s13  ;;  %v2609_v10 = vsel %vm1287_vm2, %v5173_v15, 0.0 }
 0x67b   : > { %2006 = vrot.lane.b32.xlu0 %v1926_v18, %s4484_s1 }
 0x67f   : > { %2014 = vrot.lane.b32.xlu0 %v1927_v54, %s4485_s3 }
 0x685   : > { %2613 = vadd.xlane.f32.xlu1 %v2612_v24 }
 0x689   : > { %2610 = vadd.xlane.f32.xlu1 %v2609_v10 }
 0x69a   : > { %4149 = vrot.lane.b32.xlu1 %v4897_v12, %s4478_s22  ;;  %s4367_s22 = sshll.u32 %s4486_s26, 4  ;;  %s4368_s22 = int_to_ptr.vmem [resolvable:$false] %s4367_s22 }
 0x69b   : > { %s4369_s21 = scalar_lea.vmem %s4368_s22, 1024  ;;  %p4370_p2 = scmp.lt.s32.totalorder %s5310_s16, %s4368_s22 }
 0x69c   : > { %p4371_p9 = scmp.lt.s32.totalorder %s4369_s21, %s4363_s30 }
 0x69e   : > { %2000 = vrot.lane.b32.xlu1 %v1993_v4, %s4483_s13  ;;  %p4372_p10 = por %p4371_p9, %p4370_p2 }
 0x6a0   : > { %p4373_p1 = pnand %p4372_p10, %p4366_p6 }
 0x6a2   : > { %2008 = vrot.lane.b32.xlu1 %v1994_v6, %s4484_s1 }
 0x6a6   : > { %2016 = vrot.lane.b32.xlu1 %v1995_v8, %s4485_s3 }
 0x6c0   : > { %v2596_v2 = vpop.xlane.xlu0 %2595 }
 0x6c1   : > { %4201 = vrcp.f32 %v2596_v2 }
 0x6c4   : > { %v2593_v3 = vpop.xlane.xlu0 %2592 }
 0x6c5   : > { %4203 = vrcp.f32 %v2593_v3 }
 0x6cb   : > { %v4202_v12 = vpop.eup %4201 }
 0x6cc   : > { %v2624_v18 = vmul.f32 %v4202_v12, %v2596_v2 }
 0x6ce   : > { %v2632_v21 = vsub.f32 2.0, %v2624_v18 }
 0x6cf   : > { %v4204_v54 = vpop.eup %4203 }
 0x6d0   : > { %v2623_v26 = vmul.f32 %v4204_v54, %v2593_v3  ;;  %v2640_v28 = vmul.f32 %v4202_v12, %v2632_v21  ;;  %v4025_v3 = vpack.c.bf16 %v3303_v7, %v3302_v55 }
 0x6d2   : > { %v2631_v4 = vsub.f32 2.0, %v2623_v26  ;;  %v5195_v6 = vmul.f32 %v5129_v27, %v2640_v28 }
 0x6d4   : > { %v2639_v17 = vmul.f32 %v4204_v54, %v2631_v4 }
 0x6d6   : > { %v5192_v25 = vmul.f32 %v5133_v40, %v2639_v17 }
 0x6d8   : > { %3927 = vmatprep.mubr.msk.f32.mxu0 %vm1287_vm2, %v5192_v25 }
 0x6d9   : > { %3928 = vmatmul.mubr.msk.f32.vlgmr.msra.gmra.mrb[14].mxu0 %vm1287_vm2, %v5195_v6  ;;  %v2602_v61 = vpop.xlane.xlu1 %2601 }
 0x6da   : > { %4205 = vrcp.f32 %v2602_v61 }
 0x6dd   : > { %v2599_v62 = vpop.xlane.xlu1 %2598 }
 0x6de   : > { %4207 = vrcp.f32 %v2599_v62 }
 0x6e1   : > { %v4145_v8 = vpop.permute.xlu1 %4144 }
 0x6e2   : > { %v4147_v35 = vunpack.i.h.bf16 %v4145_v8  ;;  %v4146_v36 = vunpack.i.l.bf16 %v4145_v8 }
 0x6e4   : > { %v4013_v37 = vpack.c.bf16 %v4147_v35, %v4146_v36  ;;  %v4206_v39 = vpop.eup %4205 }
 0x6e5   : > { %v2626_v40 = vmul.f32 %v4206_v39, %v2602_v61 }
 0x6e6   : > { %v2608_v27 = vpop.xlane.xlu0 %2607  ;;  %4014 = vmatprep.subr.bf16.mxu0 %v4013_v37 }
 0x6e7   : > { %4209 = vrcp.f32 %v2608_v27  ;;  %4016 = vmatpush3.bf16.msra.mxu0 %v4013_v37  ;;  %v2634_v31 = vsub.f32 2.0, %v2626_v40 }
 0x6e8   : > { %v4208_v33 = vpop.eup %4207  ;;  %4022 = vmatprep.subr.bf16.mxu0 %v4021_v38 }
 0x6e9   : > { %v2625_v41 = vmul.f32 %v4208_v33, %v2599_v62  ;;  %v2642_v13 = vmul.f32 %v4206_v39, %v2634_v31  ;;  %v3288_v62 = vsel %vm1287_vm2, %v5195_v6, 0.0 }
 0x6ea   : > { %v2605_v60 = vpop.xlane.xlu0 %2604 }
 0x6eb   : > { %v2633_v42 = vsub.f32 2.0, %v2625_v41  ;;  %4211 = vrcp.f32 %v2605_v60  ;;  %v2650_v51 = vmul.f32 %v5137_v16, %v2642_v13 }
 0x6ed   : > { %v2641_v29 = vmul.f32 %v4208_v33, %v2633_v42  ;;  %v3289_v28 = vsel %vm1287_vm2, %v2650_v51, 0.0 }
 0x6ee   : > { %v4140_v11 = vpop.permute.xlu0 %4139  ;;  %v3290_v36 = vadd.f32 %v3289_v28, %v3288_v62 }
 0x6ef   : > { %v2649_v32 = vmul.f32 %v5141_v47, %v2641_v29  ;;  %v4142_v43 = vunpack.i.h.bf16 %v4140_v11  ;;  %v4141_v44 = vunpack.i.l.bf16 %v4140_v11 }
 0x6f1   : > { %v4210_v30 = vpop.eup %4209  ;;  %v4009_v45 = vpack.c.bf16 %v4142_v43, %v4141_v44  ;;  %3934 = vmatprep.mubr.msk.f32.mxu1 %vm1287_vm2, %v2649_v32  ;;  %v3282_v37 = vsel %vm1287_vm2, %v2649_v32, 0.0 }
 0x6f2   : > { %v2628_v49 = vmul.f32 %v4210_v30, %v2608_v27  ;;  %v1999_v48 = vpop.permute.xlu0 %1998  ;;  %v3281_v27 = vsel %vm1287_vm2, %v5192_v25, 0.0 }
 0x6f3   : > { %4010 = vmatprep.subr.bf16.mxu1 %v4009_v45  ;;  %v2020_v16 = vsel %vm970_vm1, %v1924_v19, %v1999_v48  ;;  %v3283_v31 = vadd.f32 %v3282_v37, %v3281_v27 }
 0x6f4   : > { %4012 = vmatpush3.bf16.msra.mxu1 %v4009_v45  ;;  %v2636_v53 = vsub.f32 2.0, %v2628_v49 }
 0x6f5   : > { %v4212_v50 = vpop.eup %4211 }
 0x6f6   : > { %v2627_v56 = vmul.f32 %v4212_v50, %v2605_v60  ;;  %v2007_v57 = vpop.permute.xlu0 %2006  ;;  %v2644_v58 = vmul.f32 %v4210_v30, %v2636_v53 }
 0x6f7   : > { %3935 = vmatmul.mubr.msk.f32.vlgmr.msra.gmra.mrb[22].mxu1 %vm1287_vm2, %v2650_v51  ;;  %v2022_v12 = vsel %vm1287_vm2, %v2020_v16, %v2007_v57 }
 0x6f8   : > { %v2635_v47 = vsub.f32 2.0, %v2627_v56  ;;  %v2652_v2 = vmul.f32 %v5145_v46, %v2644_v58  ;;  %v5244_v56 = vld [vmem:[%s5406_s6] ss:$0 sm:$0xff] }
 0x6fa   : > { %v2643_v20 = vmul.f32 %v4212_v50, %v2635_v47  ;;  %v2015_v10 = vpop.permute.xlu0 %2014  ;;  %v3291_v8 = vsel %vm1287_vm2, %v2652_v2, 0.0 }
 0x6fb   : > { %v2025_v18 = vsel %vm2024_vm3, %v2022_v12, %v2015_v10  ;;  %v3292_v33 = vadd.f32 %v3291_v8, %v3290_v36 }
 0x6fc   : > { %v2651_v24 = vmul.f32 %v5149_v52, %v2643_v20 }
 0x6fe   : > { %3941 = vmatprep.mubr.msk.f32.mxu0 %vm1287_vm2, %v2651_v24  ;;  %v3284_v40 = vsel %vm1287_vm2, %v2651_v24, 0.0 }
 0x6ff   : > { %3942 = vmatmul.mubr.msk.f32.vlgmr.msra.gmra.mrb[16].mxu0 %vm1287_vm2, %v2652_v2  ;;  %v3285_v14 = vadd.f32 %v3284_v40, %v3283_v31 }
 0x700   : > { %3959 = vmatprep.mubr.msk.f32.mxu0 %vm480_vm0, %v2025_v18  ;;  %4024 = vmatpush3.bf16.msra.mxu0 %v4021_v38 }
 0x701   : > { %4026 = vmatprep.subr.bf16.mxu0 %v4025_v3 }
 0x704   : > { %4028 = vmatpush3.bf16.msra.mxu0 %v4025_v3 }
 0x712   : > { %v2614_v46 = vpop.xlane.xlu1 %2613 }
 0x713   : > { %4213 = vrcp.f32 %v2614_v46 }
 0x716   : > { %v2611_v52 = vpop.xlane.xlu1 %2610 }
 0x717   : > { %4215 = vrcp.f32 %v2611_v52 }
 0x71a   : > { %v4150_v0 = vpop.permute.xlu1 %4149 }
 0x71b   : > { %v4152_v1 = vunpack.i.h.bf16 %v4150_v0  ;;  %v4151_v19 = vunpack.i.l.bf16 %v4150_v0 }
 0x71d   : > { %v4214_v54 = vpop.eup %4213  ;;  %v4017_v21 = vpack.c.bf16 %v4152_v1, %v4151_v19 }
 0x71e   : > { %v2630_v26 = vmul.f32 %v4214_v54, %v2614_v46  ;;  %v2001_v4 = vpop.permute.xlu1 %2000 }
 0x71f   : > { %4018 = vmatprep.subr.bf16.mxu1 %v4017_v21  ;;  %v2021_v6 = vsel %vm970_vm1, %v1992_v9, %v2001_v4 }
 0x720   : > { %v2638_v17 = vsub.f32 2.0, %v2630_v26  ;;  %4020 = vmatpush3.bf16.msra.mxu1 %v4017_v21 }
 0x721   : > { %v4216_v61 = vpop.eup %4215 }
 0x722   : > { %v2646_v22 = vmul.f32 %v4214_v54, %v2638_v17  ;;  %v2629_v34 = vmul.f32 %v4216_v61, %v2611_v52  ;;  %v2009_v35 = vpop.permute.xlu1 %2008 }
 0x723   : > { %v2023_v42 = vsel %vm1287_vm2, %v2021_v6, %v2009_v35 }
 0x724   : > { %v2654_v38 = vmul.f32 %v5169_v23, %v2646_v22  ;;  %v2637_v39 = vsub.f32 2.0, %v2629_v34 }
 0x726   : > { %v3293_v41 = vsel %vm1287_vm2, %v2654_v38, 0.0  ;;  %v2645_v60 = vmul.f32 %v4216_v61, %v2637_v39  ;;  %v2017_v23 = vpop.permute.xlu1 %2016 }
 0x727   : > { %v3294_v29 = vadd.f32 %v3293_v41, %v3292_v33  ;;  %v2026_v25 = vsel %vm2024_vm3, %v2023_v42, %v2017_v23 }
 0x728   : > { %v2653_v11 = vmul.f32 %v5173_v15, %v2645_v60  ;;  %3960 = vmatmul.mubr.msk.f32.vlgmr.msra.gmra.mrb[18].mxu0 %vm480_vm0, %v2026_v25 }
 0x729   : > { %v3296_v59 = vmul.f32 0.25, %v3294_v29 }
 0x72a   : > { %v3286_v9 = vsel %vm1287_vm2, %v2653_v11, 0.0  ;;  %3948 = vmatprep.mubr.msk.f32.mxu1 %vm1287_vm2, %v2653_v11 }
 0x72b   : > { %3699 = vst.msk [vmem:[%s5027_s24 + $0x18] sm:$0xff] %vm1287_vm2, %v3296_v59  ;;  %v3287_v32 = vadd.f32 %v3286_v9, %v3285_v14  ;;  %3949 = vmatmul.mubr.msk.f32.vlgmr.msra.gmra.mrb[24].mxu1 %vm1287_vm2, %v2654_v38 }
 0x72d   : > { %v3295_v43 = vmul.f32 0.25, %v3287_v32 }
 0x72f   : > { %3698 = vst.msk [vmem:[%s5027_s24 + $0x10] sm:$0xff] %vm1287_vm2, %v3295_v43 }
 0x7ac   : > { %v3929_v44 = vpop.f32.mrb[14].mxu0 }
 0x7ad   : > { %v2727_v30 = vpop.f32.mrb[15].mxu0 }
 0x7ca   : > { %v3936_v15 = vpop.f32.mrb[22].mxu1 }
 0x7cb   : > { %v2808_v13 = vpop.f32.mrb[23].mxu1 }
 0x7d2   : > { %v3943_v45 = vpop.f32.mrb[16].mxu0 }
 0x7d3   : > { %v3047_v49 = vcombine.low %v3929_v44, %v3943_v45  ;;  %v3048_v48 = vcombine.high %v3929_v44, %v3943_v45  ;;  %v2889_v50 = vpop.f32.mrb[17].mxu0 }
 0x7d4   : > { %v2979_v51 = vcombine.low %v2727_v30, %v2889_v50  ;;  %v2980_v53 = vcombine.high %v2727_v30, %v2889_v50 }
 0x7d5   : > { %v3055_v3 = vrot.slane %v3047_v49, %v5051_v63  ;;  %v3062_v12 = vrot.slane %v3048_v48, %v5051_v63 }
 0x7d6   : > { %v2987_v52 = vrot.slane %v2979_v51, %v5051_v63  ;;  %v2994_v0 = vrot.slane %v2980_v53, %v5051_v63 }
 0x7fb   : > { %v3961_v57 = vpop.f32.mrb[18].mxu0 }
 0x7fc   : > { %v3395_v47 = vadd.f32 %v3961_v57, %v5244_v56  ;;  %v3389_v58 = vpop.f32.mrb[19].mxu0 }
 0x7fd   : > { %v3390_v20 = vadd.f32 %v5244_v56, %v3389_v58 }
 0x7fe   : > { %3409 = vst.msk [vmem:[%s5249_s19 + $0x8] sm:$0xff] %vm480_vm0, %v3395_v47  ;;  %v3950_v55 = vpop.f32.mrb[24].mxu1 }
 0x7ff   : > { %3408 = vst.msk [vmem:[%s5249_s19] sm:$0xff] %vm480_vm0, %v3390_v20  ;;  %v3063_v7 = vcombine.low %v3936_v15, %v3950_v55  ;;  %v3064_v24 = vcombine.high %v3936_v15, %v3950_v55  ;;  %v2970_v10 = vpop.f32.mrb[25].mxu1 }
 0x800   : > { %v2995_v2 = vcombine.low %v2808_v13, %v2970_v10  ;;  %v2996_v16 = vcombine.high %v2808_v13, %v2970_v10 }
 0x801   : > { %v3071_v18 = vrot.slane %v3063_v7, %v5051_v63  ;;  %v3078_v46 = vrot.slane %v3064_v24, %v5051_v63 }
 0x802   : > { %v3003_v1 = vrot.slane %v2995_v2, %v5051_v63  ;;  %v3010_v19 = vrot.slane %v2996_v16, %v5051_v63 }
 0x803   : > { %v3079_v54 = vcombine.low %v3055_v3, %v3071_v18  ;;  %v3080_v21 = vcombine.high %v3055_v3, %v3071_v18  ;;  %v3095_v26 = vcombine.low %v3062_v12, %v3078_v46  ;;  %v3096_v4 = vcombine.high %v3062_v12, %v3078_v46 }
 0x804   : > { %v3011_v28 = vcombine.low %v2987_v52, %v3003_v1  ;;  %v3012_v17 = vcombine.high %v2987_v52, %v3003_v1  ;;  %v3027_v61 = vcombine.low %v2994_v0, %v3010_v19  ;;  %v3028_v62 = vcombine.high %v2994_v0, %v3010_v19 }
 0x805   : > { %v3087_v8 = vrot.slane %v3079_v54, %v5055_v5  ;;  %v3094_v22 = vrot.slane %v3080_v21, %v5055_v5  ;;  %v3103_v34 = vrot.slane %v3095_v26, %v5055_v5  ;;  %v3110_v35 = vrot.slane %v3096_v4, %v5055_v5 }
 0x806   : > { %v3019_v36 = vrot.slane %v3011_v28, %v5055_v5  ;;  %v3026_v37 = vrot.slane %v3012_v17, %v5055_v5  ;;  %v3035_v38 = vrot.slane %v3027_v61, %v5055_v5  ;;  %v3042_v39 = vrot.slane %v3028_v62, %v5055_v5 }
 0x807   : > { %v3183_v27 = vcombine.low %v3087_v8, %v3094_v22  ;;  %v3696_v33 = vcombine.high %v3087_v8, %v3094_v22  ;;  %v3199_v6 = vcombine.low %v3103_v34, %v3110_v35  ;;  %v3697_v40 = vcombine.high %v3103_v34, %v3110_v35 }
 0x808   : > { %v3115_v41 = vcombine.low %v3019_v36, %v3026_v37  ;;  %v3694_v60 = vcombine.high %v3019_v36, %v3026_v37  ;;  %v3131_v42 = vcombine.low %v3035_v38, %v3042_v39  ;;  %v3695_v23 = vcombine.high %v3035_v38, %v3042_v39 }
 0x809   : > { %v3190_v31 = vrot.slane %v3183_v27, %v5051_v63  ;;  %v3198_v29 = vrot.slane %v3696_v33, %v5051_v63  ;;  %v3206_v25 = vrot.slane %v3199_v6, %v5051_v63  ;;  %v3214_v11 = vrot.slane %v3697_v40, %v5051_v63 }
 0x80a   : > { %v3122_v14 = vrot.slane %v3115_v41, %v5051_v63  ;;  %v3130_v59 = vrot.slane %v3694_v60, %v5051_v63  ;;  %v3138_v9 = vrot.slane %v3131_v42, %v5051_v63  ;;  %v3146_v32 = vrot.slane %v3695_v23, %v5051_v63 }
 0x80b   : > { %v3215_v43 = vcombine.low %v3190_v31, %v3198_v29  ;;  %v3231_v44 = vcombine.low %v3206_v25, %v3214_v11  ;;  %v3216_v30 = vcombine.high %v3190_v31, %v3198_v29  ;;  %v3232_v15 = vcombine.high %v3206_v25, %v3214_v11 }
 0x80c   : > { %v3147_v13 = vcombine.low %v3122_v14, %v3130_v59  ;;  %v3163_v45 = vcombine.low %v3138_v9, %v3146_v32  ;;  %v3148_v49 = vcombine.high %v3122_v14, %v3130_v59  ;;  %v3164_v48 = vcombine.high %v3138_v9, %v3146_v32 }
 0x80d   : > { %v3223_v50 = vrot.slane %v3215_v43, %v5055_v5  ;;  %v3239_v51 = vrot.slane %v3231_v44, %v5055_v5  ;;  %v3230_v53 = vrot.slane %v3216_v30, %v5055_v5  ;;  %v3246_v57 = vrot.slane %v3232_v15, %v5055_v5 }
 0x80e   : > { %v3155_v47 = vrot.slane %v3147_v13, %v5055_v5  ;;  %v3171_v63 = vrot.slane %v3163_v45, %v5055_v5  ;;  %v3162_v58 = vrot.slane %v3148_v49, %v5055_v5  ;;  %v3178_v20 = vrot.slane %v3164_v48, %v5055_v5 }
 0x80f   : > { %v3248_v55 = vcombine.high %v3223_v50, %v3239_v51  ;;  %v3249_v7 = vcombine.low %v3230_v53, %v3246_v57  ;;  %v3250_v24 = vcombine.high %v3230_v53, %v3246_v57  ;;  %v3247_v10 = vcombine.low %v3223_v50, %v3239_v51 }
 0x810   : > { %v3180_v2 = vcombine.high %v3155_v47, %v3171_v63  ;;  %v3181_v16 = vcombine.low %v3162_v58, %v3178_v20  ;;  %v3182_v3 = vcombine.high %v3162_v58, %v3178_v20  ;;  %v3179_v12 = vcombine.low %v3155_v47, %v3171_v63 }
 0x811   : > { %3255 = vrot.lane.b32.xlu1 %v3248_v55, %s4483_s13 }
 0x812   : > { %3253 = vrot.lane.b32.xlu0 %v3180_v2, %s4483_s13 }
 0x815   : > { %3263 = vrot.lane.b32.xlu1 %v3249_v7, %s4484_s1 }
 0x816   : > { %3261 = vrot.lane.b32.xlu0 %v3181_v16, %s4484_s1 }
 0x819   : > { %3271 = vrot.lane.b32.xlu1 %v3250_v24, %s4485_s3 }
 0x81a   : > { %3269 = vrot.lane.b32.xlu0 %v3182_v3, %s4485_s3 }
 0x883   : > { %v3256_v5 = vpop.permute.xlu1 %3255 }
 0x884   : > { %v3254_v18 = vpop.permute.xlu0 %3253  ;;  %v3276_v19 = vsel %vm970_vm1, %v3247_v10, %v3256_v5 }
 0x885   : > { %v3275_v0 = vsel %vm970_vm1, %v3179_v12, %v3254_v18 }
 0x887   : > { %v3264_v46 = vpop.permute.xlu1 %3263 }
 0x888   : > { %v3262_v52 = vpop.permute.xlu0 %3261  ;;  %v3278_v26 = vsel %vm1287_vm2, %v3276_v19, %v3264_v46 }
 0x889   : > { %v3277_v54 = vsel %vm1287_vm2, %v3275_v0, %v3262_v52 }
 0x88b   : > { %v3272_v1 = vpop.permute.xlu1 %3271 }
 0x88c   : > { %v3270_v21 = vpop.permute.xlu0 %3269  ;;  %v3280_v28 = vsel %vm2024_vm3, %v3278_v26, %v3272_v1 }
 0x88d   : > { %v3279_v4 = vsel %vm2024_vm3, %v3277_v54, %v3270_v21 }
 0x88e   : > { %3962 = vmatprep.mubr.msk.f32.mxu0 %vm480_vm0, %v3279_v4 }
 0x88f   : > { %3963 = vmatmul.mubr.msk.f32.gmra.mrb[20].mxu0 %vm480_vm0, %v3280_v28 }
 0x890   : > { %4376 = shalt.err (!%p4373_p1)
}
 0x891   : > { %s4377_s11 = scalar_lea.hbm %s5307_s10, 512  ;;  %s4381_s24 = scalar_lea.hbm %s5408_s8, 1024 }
 0x892   : > { %p4378_p5 = scmp.ne.s32.totalorder %s5307_s10, %s4377_s11  ;;  %p4382_p4 = scmp.lt.u32.totalorder %s5307_s10, %s5408_s8 }
 0x893   : > { %p4383_p8 = scmp.lt.u32.totalorder %s4381_s24, %s4377_s11  ;;  %p4385_p3 = scmp.lt.u32.totalorder %s4377_s11, %s5307_s10 }
 0x894   : > { %p4379_p11 = pnand %p4378_p5, %p5463_p7 }
 0x895   : > { %p4384_p13 = por %p4383_p8, %p4382_p4 }
 0x896   : > { %p4380_p12 = pneg %p4379_p11 }
 0x897   : > { %p4386_p0 = por %p4385_p3, %p4384_p13 }
 0x899   : > { %p4387_p6 = pnand %p4386_p0, %p4380_p12 }
 0x89b   : > { %4390 = shalt.err (!%p4387_p6)
}
 0x89c   : > { %s4487_s12 = smov 128   ;;  %s3432_s27 = sshll.u32 %s5249_s19, 4  ;;  %s5340_s27 = int_to_ptr.vmem [resolvable:$true] %s3432_s27 }
 0x89d   : > { %4044 = dma.vmem_to_hbm [thread:$0]  (%p5463_p7), %s5310_s16, 512, %s5307_s10, %s3418_s7, %s4487_s12, %s4487_s12, %s4483_s13  }
 0x89e   : > { %s5464_s30 = sld [smem:[#allocation26_spill]]  ;;  %s3413_s10 = scalar_lea.sflag [#allocation4], %s4790_s25 }
 0x89f   : > { %s4391_s16 = scalar_lea.vmem %s5340_s27, 512  ;;  %s4488_s7 = smov [#allocation11]  }
 0x8a0   : > { %p4392_p2 = scmp.ne.s32.totalorder %s5340_s27, %s4391_s16  ;;  %s4395_s21 = sshll.u32 %s4488_s7, 4  ;;  %s4396_s21 = int_to_ptr.vmem [resolvable:$false] %s4395_s21 }
 0x8a1   : > { %s4397_s11 = scalar_lea.vmem %s4396_s21, 1024  ;;  %p4398_p1 = scmp.lt.s32.totalorder %s5340_s27, %s4396_s21 }
 0x8a2   : > { %p4393_p9 = pnand %p4392_p2, %p5463_p7  ;;  %p4399_p5 = scmp.lt.s32.totalorder %s4397_s11, %s4391_s16 }
 0x8a4   : > { %s5465_s26 = smov %s5464_s30  ;;  %s5349_s22 = scalar_lea.hbm %s5464_s30, %s3722_s18 }
 0x8a5   : > { %p4394_p10 = pneg %p4393_p9  ;;  %p4400_p11 = por %p4399_p5, %p4398_p1 }
 0x8a7   : > { %p4401_p12 = pnand %p4400_p11, %p4394_p10 }
 0x962   : > { %v3964_v17 = vpop.f32.mrb[20].mxu0 }
 0x963   : > { %v3405_v61 = vadd.f32 %v3964_v17, %v5244_v56  ;;  %v3399_v62 = vpop.f32.mrb[21].mxu0 }
 0x964   : > { %v3400_v8 = vadd.f32 %v5244_v56, %v3399_v62 }
 0x965   : > { %3411 = vst.msk [vmem:[%s5249_s19 + $0x18] sm:$0xff] %vm480_vm0, %v3405_v61 }
 0x966   : > { %3410 = vst.msk [vmem:[%s5249_s19 + $0x10] sm:$0xff] %vm480_vm0, %v3400_v8 }
 0x967   : > { %4404 = shalt.err (!%p4401_p12)
}
 0x968   : > { %s4405_s9 = scalar_lea.hbm %s5349_s22, 512  ;;  %s4409_s20 = scalar_lea.hbm %s5465_s26, 1024 }
 0x969   : > { %p4406_p4 = scmp.ne.s32.totalorder %s5349_s22, %s4405_s9  ;;  %p4410_p3 = scmp.lt.u32.totalorder %s5349_s22, %s5465_s26 }
 0x96a   : > { %p4411_p0 = scmp.lt.u32.totalorder %s4409_s20, %s4405_s9  ;;  %p4413_p2 = scmp.lt.u32.totalorder %s4405_s9, %s5349_s22 }
 0x96b   : > { %p4407_p8 = pnand %p4406_p4, %p5463_p7 }
 0x96c   : > { %p4412_p6 = por %p4411_p0, %p4410_p3 }
 0x96d   : > { %p4408_p13 = pneg %p4407_p8 }
 0x96e   : > { %p4414_p9 = por %p4413_p2, %p4412_p6 }
 0x970   : > { %p4415_p10 = pnand %p4414_p9, %p4408_p13 }
 0x972   : > { %4418 = shalt.err (!%p4415_p10)
}
 0x973   : > { %4043 = dma.vmem_to_hbm [thread:$0]  (%p5463_p7), %s5340_s27, 512, %s5349_s22, %s3413_s10, %s4487_s12, %s4487_s12, %s4483_s13  }
 0x974 PF: > { %s5466_s1 = sld [smem:[#allocation19_spill]]  ;;  %s5467_s3 = sld [smem:[#allocation23_spill]] }
 0x975   : > { %s5468_s15 = sld [smem:[#allocation20_spill]] }
 0x97a   : > { %s3464_s14 = sand.u32 1, %s5466_s1   ;;  %p5469_p1 = scmp.ne.s32.totalorder %s5467_s3, 0 }
 0x97b   : > { %p5470_p5 = scmp.ge.s32.totalorder %s5468_s15, 2  ;;  %s3465_s30 = scalar_lea.sflag [#allocation4], %s3464_s14 }
 0x97d   : > { %p4065_p11 = pnand %p5470_p5, %p5469_p1 }
 0x97f   : > { %4448 = dma.done.wait (!%p4065_p11), %s3465_s30, 512  }
 0x980   : > { %4450 = vsyncadd (!%p4065_p11), %s3465_s30, 4294966784  ;;  %s3474_s17 = scalar_lea.sflag [#allocation13], %s3464_s14 }
 0x981   : > { %4452 = dma.done.wait (!%p4065_p11), %s3474_s17, 512  }
 0x982   : > { %4454 = vsyncadd (!%p4065_p11), %s3474_s17, 4294966784  ;;  %s5471_s30 = sld [smem:[#allocation21_spill]]  ;;  %s5472_s25 = sld [smem:[#allocation22_spill]] }
 0x983   : > { %s5473_s27 = smov %s4461_s28  ;;  %s5474_s28 = smov %s4465_s29 }
 0x988   : > { %p29_p7 = scmp.ge.s32.totalorder %s5471_s30, 4   ;;  %s5475_s29 = smov %s5472_s25 }
 0x98a   :  { %31 = sbr.rel (!%p29_p7) target bundleno = 14 (0xe), region = 145 }
 0x991   :  { %3479 = vsyncpa [#allocation3], 1 }
 0x992   :  { %3481 = vsyncpa [#allocation3 + $0x1], 1 }
 0x993   :  { %3482 = vsyncpa [#allocation6], 1 }
 0x994   :  { %3484 = vsyncpa [#allocation6 + $0x1], 1 }
 0x995   :  { %3485 = vsyncpa [#allocation9], 1 }
 0x996   :  { %3486 = vsyncpa [#allocation4], 1 }
 0x997   :  { %3488 = vsyncpa [#allocation4 + $0x1], 1 }
 0x998   :  { %3489 = vsyncpa [#allocation13], 1 }
 0x999   :  { %3491 = vsyncpa [#allocation13 + $0x1], 1 }

</bundles_post_ra>
